<compile_context>
chip_gen: v6e
topology: v6e:2x2x1
jax: 0.10.0
libtpu: 0.0.40
codegen_flags: <defaults>
</compile_context>

<pallas_src>
import functools

import jax
import jax.numpy as jnp
from jax import lax
from jax.experimental import pallas as pl
from jax.experimental.pallas import tpu as pltpu


def weight_and_sum_kernel(feats_ref, wrow_ref, bias_ref, smask_ref, seg_ref,
                          hsum_ref, weight_ref, *, n_atoms, tiles_per_part,
                          tile_n):
    p = pl.program_id(0)          # parallel part (TensorCore split on v7x)
    i = pl.program_id(1)          # atom-tile within the part (reduction axis)

    # Per-part resident (B, D) accumulator == the output block itself.
    @pl.when(i == 0)
    def _():
        hsum_ref[...] = jnp.zeros_like(hsum_ref)

    g = p * tiles_per_part + i    # global (unclamped) atom-tile index
    start = g * tile_n            # global atom index of lane/row 0 of the tile

    feats = feats_ref[...]        # (TN, D), feats dtype (f32 or bf16)
    # Zero garbage rows (ragged last tile / overflow slots): OOB reads are not
    # zero-filled and 0 * NaN would otherwise poison the segment matmul.
    row = lax.broadcasted_iota(jnp.int32, (tile_n, 1), 0)
    feats = jnp.where(start + row < n_atoms, feats, 0)

    wrow = wrow_ref[...]          # (1, D), feats dtype

    # Linear(in_feats, 1) logits, lane-dense: (1, D) . (TN, D)^T -> (1, TN).
    logits = lax.dot_general(
        wrow, feats, (((1,), (1,)), ((), ())),
        precision=lax.Precision.HIGHEST,
        preferred_element_type=jnp.float32)                       # (1, TN)

    # Lane validity mask: lanes whose global atom index is >= N are padding.
    lane = lax.broadcasted_iota(jnp.int32, (1, tile_n), 1)
    valid = (start + lane) < n_atoms                               # (1, TN)

    w = jnp.where(valid,
                  jax.nn.sigmoid(logits + bias_ref[0, 0]) * smask_ref[...],
                  0.0)                                             # (1, TN) f32

    # Store atom weights only on real tiles; overflow slots of an uneven
    # parallel split share (clamped index map) the last tile's output block
    # and must not overwrite it.  Pallas masks the OOB tail of the write-back.
    @pl.when(start < n_atoms)
    def _():
        weight_ref[...] = w.astype(weight_ref.dtype)

    # Per-graph weighted segment sum: build the (B, TN) membership mask
    # in-kernel from the seg ids, pre-scaled by the atom weights, and hit the
    # MXU once per tile.  (For very large B, cache graph_ids / use sorted-seg
    # per-tile graph ranges instead — VALU-bound regime; irrelevant at small B.)
    num_graphs = hsum_ref.shape[0]
    graph_ids = lax.broadcasted_iota(jnp.int32, (num_graphs, tile_n), 0)
    wmember = jnp.where(graph_ids == seg_ref[...], w, 0.0)         # (B, TN)
    hsum_ref[...] += jnp.dot(wmember.astype(feats.dtype), feats,
                             precision=lax.Precision.HIGHEST,
                             preferred_element_type=jnp.float32)   # (B, D)


def _pick_block_n(n_atoms, d, itemsize):
    """Atom-tile size: feats block ~4 MiB (double-buffered ~8 MiB), a multiple
    of 128 lanes, capped at 8192 atoms and at what the input actually needs."""
    target_bytes = 4 * 1024 * 1024
    tn = target_bytes // max(d * itemsize, 1)
    tn = min(tn, 8192)
    tn = min(tn, ((n_atoms + 127) // 128) * 128)
    return max(128, (tn // 128) * 128)


def _auto_num_parts():
    """2 on chips with 2 TensorCores (v7x); 1 elsewhere (v5e / v6e)."""
    try:
        dev = jax.devices()[0]
        cores = getattr(dev, "num_cores", None)
        if cores is not None:
            return max(1, min(2, int(cores)))
        if "v7" in str(getattr(dev, "device_kind", "")).lower():
            return 2
    except Exception:
        pass
    return 1


def weight_and_sum(feats, lin_w, lin_b, smask, seg_ids, num_graphs, *,
                   block_n=None, num_parts=None):
    """feats (N, D) f32/bf16; lin_w (1, D); lin_b (1,); smask (N, 1);
    seg_ids (N,) int32 graph id per atom; num_graphs: static int B.
    Returns (h_g_sum (B, D), weight (N, 1))."""
    N, D = feats.shape
    B = int(num_graphs)
    itemsize = jnp.dtype(feats.dtype).itemsize

    if block_n is None:
        TN = _pick_block_n(N, D, itemsize)
    else:
        TN = max(128, (int(block_n) // 128) * 128)
    n_tiles = (N + TN - 1) // TN

    if num_parts is None:
        num_parts = _auto_num_parts()
    num_parts = max(1, min(int(num_parts), n_tiles))
    # No part may consist purely of overflow slots (its weight block would
    # never be written).  For num_parts <= 2 this never triggers.
    while (num_parts > 1 and
           (num_parts - 1) * (-(-n_tiles // num_parts)) >= n_tiles):
        num_parts -= 1
    tpp = -(-n_tiles // num_parts)          # tiles per part (ceil)
    last_tile = n_tiles - 1

    def atom_tile(p, i):                    # clamp overflow slots to last tile
        return jnp.minimum(p * tpp + i, last_tile)

    # Tiny side inputs: lane-dense rows so the weight store is a full-lane vst
    # and seg/smask stream as (1, TN) tiles.  O(N) / O(D) work only.
    wrow = lin_w.reshape(1, D).astype(feats.dtype)
    bias = lin_b.reshape(1, 1).astype(jnp.float32)
    smask_row = smask.reshape(1, N).astype(jnp.float32)
    seg_row = seg_ids.reshape(1, N).astype(jnp.int32)

    kernel = functools.partial(weight_and_sum_kernel, n_atoms=N,
                               tiles_per_part=tpp, tile_n=TN)

    cost = pl.CostEstimate(
        flops=2 * N * D + 2 * B * N * D,
        transcendentals=N,
        bytes_accessed=(N * D * itemsize + N * (4 + 4 + itemsize)
                        + num_parts * B * D * 4 + D * itemsize + 4))

    partials, weight_row = pl.pallas_call(
        kernel,
        grid=(num_parts, tpp),
        in_specs=[
            pl.BlockSpec((TN, D), lambda p, i: (atom_tile(p, i), 0)),   # feats
            pl.BlockSpec((1, D), lambda p, i: (0, 0)),                  # W row
            pl.BlockSpec(memory_space=pltpu.MemorySpace.SMEM),          # bias
            pl.BlockSpec((1, TN), lambda p, i: (0, atom_tile(p, i))),   # smask
            pl.BlockSpec((1, TN), lambda p, i: (0, atom_tile(p, i))),   # seg ids
        ],
        out_specs=(
            pl.BlockSpec((None, B, D), lambda p, i: (p, 0, 0)),  # per-part sums
            pl.BlockSpec((1, TN), lambda p, i: (0, atom_tile(p, i))),   # weights
        ),
        out_shape=(jax.ShapeDtypeStruct((num_parts, B, D), jnp.float32),
                   jax.ShapeDtypeStruct((1, N), feats.dtype)),
        compiler_params=pltpu.CompilerParams(
            dimension_semantics=("parallel", "arbitrary"),
            vmem_limit_bytes=32 * 1024 * 1024),
        cost_estimate=cost,
    )(feats, wrow, bias, smask_row, seg_row)

    h_g_sum = partials.sum(axis=0).astype(feats.dtype)
    weight = weight_row.reshape(N, 1)
    return h_g_sum, weight


if __name__ == "__main__":
    key = jax.random.PRNGKey(0)
    k1, k2, k3, k4 = jax.random.split(key, 4)

    in_feats = 32                        # D
    sizes = (80, 75, 90, 55)             # atoms per molecule (N = 300, ragged)
    B = len(sizes)
    N = sum(sizes)
    seg_ids = jnp.concatenate([jnp.full((s,), g, dtype=jnp.int32)
                               for g, s in enumerate(sizes)])

    feats = jax.random.normal(k1, (N, in_feats), dtype=jnp.float32)
    smask = (jax.random.uniform(k2, (N, 1)) > 0.3).astype(jnp.float32)
    # nn.Linear(in_feats, 1): weight (1, in_feats), bias (1,)
    lin_w = jax.random.normal(k3, (1, in_feats), dtype=jnp.float32) * 0.1
    lin_b = jax.random.normal(k4, (1,), dtype=jnp.float32) * 0.1

    # Pure-JAX reference
    w_ref = jax.nn.sigmoid(feats @ lin_w.T + lin_b) * smask
    hsum_ref = jax.ops.segment_sum(feats * w_ref, seg_ids, num_segments=B)

    # Small tile + 2 parallel parts: exercises the ragged last tile, the
    # resident per-part accumulators, and the clamped overflow slot
    # (3 tiles split over a (2, 2) grid).
    hsum, weight = weight_and_sum(feats, lin_w, lin_b, smask, seg_ids, B,
                                  block_n=128, num_parts=2)
    jax.block_until_ready((hsum, weight))
    assert jnp.allclose(weight, w_ref, atol=1e-5, rtol=1e-5)
    assert jnp.allclose(hsum, hsum_ref, atol=1e-4, rtol=1e-5)

    # Default path (auto tile size, auto parts): single partial tile, no pad.
    hsum2, weight2 = weight_and_sum(feats, lin_w, lin_b, smask, seg_ids, B)
    jax.block_until_ready((hsum2, weight2))
    assert jnp.allclose(weight2, w_ref, atol=1e-5, rtol=1e-5)
    assert jnp.allclose(hsum2, hsum_ref, atol=1e-4, rtol=1e-5)

    print("KERNEL_OK")
</pallas_src>

<mosaic_0001>
module attributes {stable_mosaic.version = 11 : i64} {
  func.func @weight_and_sum_kernel(%arg0: i32, %arg1: i32, %arg2: memref<128x32xf32, #tpu.memory_space<vmem>>, %arg3: memref<1x32xf32, #tpu.memory_space<vmem>>, %arg4: memref<1x1xf32, #tpu.memory_space<smem>>, %arg5: memref<1x128xf32, #tpu.memory_space<vmem>>, %arg6: memref<1x128xi32, #tpu.memory_space<vmem>>, %arg7: memref<1x4x32xf32, #tpu.memory_space<vmem>>, %arg8: memref<1x128xf32, #tpu.memory_space<vmem>>) attributes {dimension_semantics = [#tpu.dimension_semantics<parallel>, #tpu.dimension_semantics<arbitrary>], iteration_bounds = array<i64: 2, 2>, scalar_prefetch = 0 : i64, scratch_operands = 0 : i64, tpu.core_type = #tpu.core_type<tc>, window_params = [{transform_indices = @transform_0, window_bounds = array<i64: 128, 32>}, {pipeline_mode = #tpu.pipeline_mode<synchronous>, transform_indices = @transform_1, window_bounds = array<i64: 1, 32>}, {transform_indices = @transform_2, window_bounds = array<i64: 1, 1>}, {transform_indices = @transform_3, window_bounds = array<i64: 1, 128>}, {transform_indices = @transform_4, window_bounds = array<i64: 1, 128>}, {transform_indices = @transform_5, window_bounds = array<i64: 1, 4, 32>}, {transform_indices = @transform_6, window_bounds = array<i64: 1, 128>}]} {
    %c0_i32 = arith.constant 0 : i32
    %0 = arith.cmpi eq, %arg1, %c0_i32 : i32
    %1 = arith.extui %0 : i1 to i32
    %c0_i32_0 = arith.constant 0 : i32
    %2 = arith.cmpi ne, %1, %c0_i32_0 : i32
    scf.if %2 {
      %cst_24 = arith.constant 0.000000e+00 : f32
      %54 = vector.broadcast %cst_24 : f32 to vector<4x32xf32>
      %c0_25 = arith.constant 0 : index
      %c0_26 = arith.constant 0 : index
      %c0_27 = arith.constant 0 : index
      %55 = vector.load %arg7[%c0_25, %c0_26, %c0_27] : memref<1x4x32xf32, #tpu.memory_space<vmem>>, vector<1x4x32xf32>
      %56 = vector.shape_cast %55 : vector<1x4x32xf32> to vector<4x32xf32>
      %57 = vector.shape_cast %54 : vector<4x32xf32> to vector<1x4x32xf32>
      tpu.vector_store %arg7[%c0_25, %c0_26, %c0_27], %57 {strides = array<i32>} : memref<1x4x32xf32, #tpu.memory_space<vmem>>, vector<1x4x32xf32>,
    } else {
    }
    %c2_i32 = arith.constant 2 : i32
    %3 = arith.muli %arg0, %c2_i32 : i32
    %4 = arith.addi %3, %arg1 : i32
    %c128_i32 = arith.constant 128 : i32
    %5 = arith.muli %4, %c128_i32 : i32
    %c0 = arith.constant 0 : index
    %c0_1 = arith.constant 0 : index
    %6 = vector.load %arg2[%c0, %c0_1] : memref<128x32xf32, #tpu.memory_space<vmem>>, vector<128x32xf32>
    %7 = tpu.iota {dimensions = array<i32: 0>} : vector<128x1xi32>
    %8 = vector.broadcast %5 : i32 to vector<128x1xi32>
    %9 = arith.addi %8, %7 : vector<128x1xi32>
    %c300_i32 = arith.constant 300 : i32
    %10 = vector.broadcast %c300_i32 : i32 to vector<128x1xi32>
    %11 = arith.cmpi slt, %9, %10 : vector<128x1xi32>
    %c0_i32_2 = arith.constant 0 : i32
    %12 = arith.sitofp %c0_i32_2 : i32 to f32
    %13 = vector.shape_cast %11 : vector<128x1xi1> to vector<128x1xi1>
    %14 = vector.broadcast %13 : vector<128x1xi1> to vector<128x32xi1>
    %15 = vector.broadcast %12 : f32 to vector<128x32xf32>
    %16 = arith.select %14, %6, %15 : vector<128x32xi1>, vector<128x32xf32>
    %c0_3 = arith.constant 0 : index
    %c0_4 = arith.constant 0 : index
    %17 = vector.load %arg3[%c0_3, %c0_4] : memref<1x32xf32, #tpu.memory_space<vmem>>, vector<1x32xf32>
    %cst = arith.constant dense<0.000000e+00> : vector<1x128xf32>
    %18 = tpu.matmul %17, %16, %cst {dimension_numbers = #tpu.dot_dimension_numbers<[1], [1], [0], [0], [0, 0, 1, 0], [], []>, precision = #tpu.contract_precision<fp32>} : vector<1x32xf32>, vector<128x32xf32>, vector<1x128xf32> -> vector<1x128xf32>
    %19 = tpu.iota {dimensions = array<i32: 1>} : vector<1x128xi32>
    %20 = vector.broadcast %5 : i32 to vector<1x128xi32>
    %21 = arith.addi %20, %19 : vector<1x128xi32>
    %c300_i32_5 = arith.constant 300 : i32
    %22 = vector.broadcast %c300_i32_5 : i32 to vector<1x128xi32>
    %23 = arith.cmpi slt, %21, %22 : vector<1x128xi32>
    %c0_6 = arith.constant 0 : index
    %c0_7 = arith.constant 0 : index
    %24 = memref.load %arg4[%c0_6, %c0_7] : memref<1x1xf32, #tpu.memory_space<smem>>
    %25 = vector.broadcast %24 : f32 to vector<1x128xf32>
    %26 = arith.addf %18, %25 : vector<1x128xf32>
    %27 = arith.negf %26 : vector<1x128xf32>
    %28 = math.exp %27 : vector<1x128xf32>
    %cst_8 = arith.constant 1.000000e+00 : f32
    %29 = vector.broadcast %cst_8 : f32 to vector<1x128xf32>
    %30 = arith.addf %29, %28 : vector<1x128xf32>
    %31 = arith.divf %29, %30 : vector<1x128xf32>
    %c0_9 = arith.constant 0 : index
    %c0_10 = arith.constant 0 : index
    %32 = vector.load %arg5[%c0_9, %c0_10] : memref<1x128xf32, #tpu.memory_space<vmem>>, vector<1x128xf32>
    %33 = arith.mulf %31, %32 : vector<1x128xf32>
    %cst_11 = arith.constant 0.000000e+00 : f32
    %34 = vector.broadcast %cst_11 : f32 to vector<1x128xf32>
    %35 = arith.select %23, %33, %34 : vector<1x128xi1>, vector<1x128xf32>
    %c300_i32_12 = arith.constant 300 : i32
    %36 = arith.cmpi slt, %5, %c300_i32_12 : i32
    %37 = arith.extui %36 : i1 to i32
    %c0_i32_13 = arith.constant 0 : i32
    %38 = arith.cmpi ne, %37, %c0_i32_13 : i32
    scf.if %38 {
      %c0_24 = arith.constant 0 : index
      %c0_25 = arith.constant 0 : index
      %54 = vector.load %arg8[%c0_24, %c0_25] : memref<1x128xf32, #tpu.memory_space<vmem>>, vector<1x128xf32>
      tpu.vector_store %arg8[%c0_24, %c0_25], %35 {strides = array<i32>} : memref<1x128xf32, #tpu.memory_space<vmem>>, vector<1x128xf32>,
    } else {
    }
    %39 = tpu.iota {dimensions = array<i32: 0>} : vector<4x128xi32>
    %c0_14 = arith.constant 0 : index
    %c0_15 = arith.constant 0 : index
    %40 = vector.load %arg6[%c0_14, %c0_15] : memref<1x128xi32, #tpu.memory_space<vmem>>, vector<1x128xi32>
    %41 = vector.broadcast %40 : vector<1x128xi32> to vector<4x128xi32>
    %42 = arith.cmpi eq, %39, %41 : vector<4x128xi32>
    %cst_16 = arith.constant 0.000000e+00 : f32
    %43 = vector.shape_cast %35 : vector<1x128xf32> to vector<1x128xf32>
    %44 = vector.broadcast %43 : vector<1x128xf32> to vector<4x128xf32>
    %45 = vector.broadcast %cst_16 : f32 to vector<4x128xf32>
    %46 = arith.select %42, %44, %45 : vector<4x128xi1>, vector<4x128xf32>
    %c0_17 = arith.constant 0 : index
    %c0_18 = arith.constant 0 : index
    %c0_19 = arith.constant 0 : index
    %47 = vector.load %arg7[%c0_17, %c0_18, %c0_19] : memref<1x4x32xf32, #tpu.memory_space<vmem>>, vector<1x4x32xf32>
    %48 = vector.shape_cast %47 : vector<1x4x32xf32> to vector<4x32xf32>
    %cst_20 = arith.constant dense<0.000000e+00> : vector<4x32xf32>
    %49 = tpu.matmul %46, %16, %cst_20 {dimension_numbers = #tpu.dot_dimension_numbers<[1], [0], [0], [1], [0, 0, 1, 1], [], []>, precision = #tpu.contract_precision<fp32>} : vector<4x128xf32>, vector<128x32xf32>, vector<4x32xf32> -> vector<4x32xf32>
    %50 = arith.addf %48, %49 : vector<4x32xf32>
    %c0_21 = arith.constant 0 : index
    %c0_22 = arith.constant 0 : index
    %c0_23 = arith.constant 0 : index
    %51 = vector.load %arg7[%c0_21, %c0_22, %c0_23] : memref<1x4x32xf32, #tpu.memory_space<vmem>>, vector<1x4x32xf32>
    %52 = vector.shape_cast %51 : vector<1x4x32xf32> to vector<4x32xf32>
    %53 = vector.shape_cast %50 : vector<4x32xf32> to vector<1x4x32xf32>
    tpu.vector_store %arg7[%c0_21, %c0_22, %c0_23], %53 {strides = array<i32>} : memref<1x4x32xf32, #tpu.memory_space<vmem>>, vector<1x4x32xf32>,
    return
  }
  func.func @transform_0(%arg0: i32, %arg1: i32) -> (i32, i32) {
    %c2_i32 = arith.constant 2 : i32
    %0 = arith.muli %arg0, %c2_i32 : i32
    %1 = arith.addi %0, %arg1 : i32
    %c2_i32_0 = arith.constant 2 : i32
    %2 = arith.minsi %1, %c2_i32_0 : i32
    %c0_i32 = arith.constant 0 : i32
    %c0_i32_1 = arith.constant 0 : i32
    return %2, %c0_i32 : i32, i32
  }
  func.func @transform_1(%arg0: i32, %arg1: i32) -> (i32, i32) {
    %c0_i32 = arith.constant 0 : i32
    %c0_i32_0 = arith.constant 0 : i32
    %c0_i32_1 = arith.constant 0 : i32
    return %c0_i32, %c0_i32_0 : i32, i32
  }
  func.func @transform_2(%arg0: i32, %arg1: i32) -> (i32, i32) {
    %c0_i32 = arith.constant 0 : i32
    %c0_i32_0 = arith.constant 0 : i32
    %c0_i32_1 = arith.constant 0 : i32
    return %c0_i32, %c0_i32_0 : i32, i32
  }
  func.func @transform_3(%arg0: i32, %arg1: i32) -> (i32, i32) {
    %c2_i32 = arith.constant 2 : i32
    %0 = arith.muli %arg0, %c2_i32 : i32
    %1 = arith.addi %0, %arg1 : i32
    %c2_i32_0 = arith.constant 2 : i32
    %2 = arith.minsi %1, %c2_i32_0 : i32
    %c0_i32 = arith.constant 0 : i32
    %c0_i32_1 = arith.constant 0 : i32
    return %c0_i32, %2 : i32, i32
  }
  func.func @transform_4(%arg0: i32, %arg1: i32) -> (i32, i32) {
    %c2_i32 = arith.constant 2 : i32
    %0 = arith.muli %arg0, %c2_i32 : i32
    %1 = arith.addi %0, %arg1 : i32
    %c2_i32_0 = arith.constant 2 : i32
    %2 = arith.minsi %1, %c2_i32_0 : i32
    %c0_i32 = arith.constant 0 : i32
    %c0_i32_1 = arith.constant 0 : i32
    return %c0_i32, %2 : i32, i32
  }
  func.func @transform_5(%arg0: i32, %arg1: i32) -> (i32, i32, i32) {
    %c0_i32 = arith.constant 0 : i32
    %c0_i32_0 = arith.constant 0 : i32
    %c0_i32_1 = arith.constant 0 : i32
    return %arg0, %c0_i32, %c0_i32_0 : i32, i32, i32
  }
  func.func @transform_6(%arg0: i32, %arg1: i32) -> (i32, i32) {
    %c2_i32 = arith.constant 2 : i32
    %0 = arith.muli %arg0, %c2_i32 : i32
    %1 = arith.addi %0, %arg1 : i32
    %c2_i32_0 = arith.constant 2 : i32
    %2 = arith.minsi %1, %c2_i32_0 : i32
    %c0_i32 = arith.constant 0 : i32
    %c0_i32_1 = arith.constant 0 : i32
    return %c0_i32, %2 : i32, i32
  }
}

</mosaic_0001>

<bundles_post_ra>
// kernel: tpu_custom_call.1
= control target key start
LH: loop header
LB: loop body
LE: loop exit
PB: predicated region body
PF: predicated region fallthrough
CT: control target
= control target key end

     0   :  { %s4162_s0 = inlined_call_operand.vmem [shape: f32[300,32], index: 0, kind: input, shape index: {}]   ;;  %s4163_s1 = inlined_call_operand.vmem [shape: f32[1,32], index: 1, kind: input, shape index: {}]   ;;  %s4164_s2 = inlined_call_operand.<no memory space> [shape: f32[1,1], index: 2, kind: input, shape index: {}]   ;;  %s4165_s3 = inlined_call_operand.vmem [shape: f32[1,300], index: 3, kind: input, shape index: {}]   ;;  %s4166_s4 = inlined_call_operand.vmem [shape: s32[1,300], index: 4, kind: input, shape index: {}]   ;;  %s4167_s5 = inlined_call_operand.hbm [shape: f32[2,4,32], index: 5, kind: output, shape index: {0}]   ;;  %s4168_s6 = inlined_call_operand.hbm [shape: f32[1,300], index: 6, kind: output, shape index: {1}]  }
   0x1   :  { %12 = sst [smem:[#allocation2]] %s4164_s2 }
   0x2   :  { %13 = vsyncpa [#allocation4], 0 }
   0x3   :  { %15 = vsyncpa [#allocation4 + $0x1], 0 }
   0x4   :  { %16 = vsyncpa [#allocation6], 0 }
   0x5   :  { %18 = vsyncpa [#allocation6 + $0x1], 0  ;;  %s3022_s23 = smov 0   ;;  %s3024_s24 = smov 0  }
   0x6   :  { %s3026_s25 = smov 0   ;;  %s3028_s26 = smov 0  }
   0x7   :  { %s3030_s27 = smov 0   ;;  %s3032_s28 = smov 0  }
   0x8   :  { %s3034_s29 = smov 0   ;;  %s3036_s30 = smov 0  }
   0x9   :  { %s3038_s2 = smov 0   ;;  %s3040_s7 = smov 0  }
   0xa   :  { %s3042_s8 = smov 0  }
   0xb LB: > { %4194 = sst [smem:[#allocation9_spill]] %s2937_s23  ;;  %s2063_s9 = sadd.s32 4294967295, %s2977_s8   ;;  %s2977_s8 = sphi %s3042_s8, %s24_s8   ;;  %s2973_s7 = sphi %s3040_s7, %s4247_s7   ;;  %s2969_s2 = sphi %s3038_s2, %s4241_s2   ;;  %s2965_s30 = sphi %s3036_s30, %s4240_s30   ;;  %s2961_s29 = sphi %s3034_s29, %s4239_s29   ;;  %s2957_s28 = sphi %s3032_s28, %s4238_s28   ;;  %s2953_s27 = sphi %s3030_s27, %s4246_s27   ;;  %s2949_s26 = sphi %s3028_s26, %s4245_s26   ;;  %s2945_s25 = sphi %s3026_s25, %s4236_s25   ;;  %s2941_s24 = sphi %s3024_s24, %s4244_s24   ;;  %s2937_s23 = sphi %s3022_s23, %s4243_s23  }
   0xc   : > { %4195 = sst [smem:[#allocation10_spill]] %s2945_s25  ;;  %s2064_s10 = sadd.s32 4294967294, %s2977_s8  }
   0xd   : > { %4196 = sst [smem:[#allocation11_spill]] %s2949_s26  ;;  %s33_s11 = sadd.s32 1, %s2969_s2 }
   0xe   : > { %4197 = sst [smem:[#allocation12_spill]] %s2957_s28  ;;  %p34_p0 = scmp.ge.s32.totalorder %s33_s11, 2 }
   0xf   : > { %4198 = sst [smem:[#allocation13_spill]] %s2969_s2  ;;  %s36_s12 = sadd.s32 1, %s2973_s7 }
  0x10   : > { %4199 = sst [smem:[#allocation14_spill]] %s2973_s7  ;;  %p197_p1 = scmp.ne.s32.totalorder %s2957_s28, %s2953_s27 }
  0x11   : > { %p3083_p2 = scmp.eq.s32.totalorder %s2063_s9, 3  ;;  %s4249_s11 = smov (%p34_p0, %s33_s11), 0 }
  0x12   : > { %4201 = sst [smem:[#allocation15_spill]] %s4249_s11  ;;  %s4251_s12 = smov (!%p34_p0, %s36_s12), %s2973_s7 }
  0x13   : > { %p3092_p3 = por %p3083_p2, %p197_p1  ;;  %p203_p4 = scmp.ne.s32.totalorder %s2953_s27, %s2949_s26 }
  0x14   : > { %p38_p5 = scmp.ge.s32.totalorder %s4251_s12, 2  ;;  %p3098_p6 = scmp.eq.s32.totalorder %s2064_s10, 3 }
  0x15   : > { %s187_s16 = sadd.s32 1, %s2957_s28  ;;  %s2071_s17 = sshll.u32 %s2973_s7, 1 }
  0x16   : > { %s4253_s12 = smov (%p38_p5, %s4251_s12), 0  ;;  %p3108_p7 = por %p3098_p6, %p203_p4 }
  0x17   : > { %4204 = sst [smem:[#allocation16_spill]] %s4253_s12  ;;  %s211_s19 = sadd.s32 %s2969_s2, %s2071_s17 }
  0x18   : > { %s4205_s18 = scalar_select %p3108_p7, 1, 0 }
  0x19   : > { %s184_s20 = ssub.s32 %s2973_s7, %s4253_s12  ;;  %p212_p8 = scmp.lt.s32.totalorder %s211_s19, 2 }
  0x1a   : > { %4206 = sst [smem:[#allocation17_spill]] %s4205_s18  ;;  %p185_p9 = scmp.eq.s32.totalorder %s184_s20, 0 }
  0x1b   : > { %s2072_s21 = sshll.u32 %s4253_s12, 1  ;;  %s4255_s19 = smov (!%p212_p8, %s211_s19), 2 }
  0x1c   : > { %s3117_s22 = scalar_select %p185_p9, %s2957_s28, %s187_s16  }
  0x1d   : > { %s215_s9 = sadd.s32 %s2072_s21, %s4249_s11  ;;  %p231_p10 = scmp.ne.s32.totalorder %s2945_s25, %s2941_s24 }
  0x1e   : > { %4207 = sst [smem:[#allocation18_spill]] %s3117_s22  ;;  %p216_p11 = scmp.lt.s32.totalorder %s215_s9, 2 }
  0x1f   : > { %p237_p12 = scmp.ne.s32.totalorder %s2941_s24, %s2937_s23  ;;  %p3126_p13 = por %p231_p10, %p3083_p2 }
  0x20   : > { %p2075_p0 = scmp.ge.s32.totalorder %s2977_s8, 1  ;;  %s4257_s9 = smov (!%p216_p11, %s215_s9), 2 }
  0x21   : > { %p3133_p1 = por %p237_p12, %p3098_p6  ;;  %p315_p4 = scmp.lt.s32.totalorder %s2977_s8, 5 }
  0x22   : > { %s218_s20 = ssub.s32 %s4255_s19, %s4257_s9  ;;  %s221_s16 = sadd.s32 1, %s2945_s25 }
  0x23   : > { %s4209_s17 = scalar_select %p3133_p1, 1, 0 }
  0x24   : > { %p219_p5 = scmp.eq.s32.totalorder %s218_s20, 0  ;;  %p316_p8 = pnand %p2075_p0, %p315_p4 }
  0x25   : > { %4210 = sst [smem:[#allocation19_spill]] %s4209_s17  ;;  %s4172_s13 = sand.u32 (!%p316_p8), 1, %s2953_s27  }
  0x26   : > { %s3140_s21 = scalar_select %p219_p5, %s2945_s25, %s221_s16  }
  0x27   : > { %319 = sbr.rel (%p316_p8) target bundleno = 817 (0x331), region = 40  ;;  %s2076_s12 = sshll.u32 (!%p316_p8), %s4172_s13, 2 }
  0x28   : > { %4211 = sst [smem:[#allocation20_spill]] %s3140_s21  ;;  %s2077_s11 = sshll.u32 (!%p316_p8), %s2965_s30, 1 }
  0x29   : > { %s3148_s7 = sadd.s32 (!%p316_p8), %s2961_s29, %s2077_s11  ;;  %s3171_s23 = scalar_lea.vmem (!%p316_p8), [#allocation3], %s2076_s12 }
  0x2a   : > { %p373_p2 = scmp.lt.s32.totalorder (!%p316_p8), %s3148_s7, 2  ;;  %s4212_s18 = sand.u32 (!%p316_p8), 1, %s2941_s24  }
  0x2b   : > { %s3175_s26 = scalar_lea.vmem (!%p316_p8), [#allocation5], %s4212_s18  ;;  %p2088_p9 = scmp.ne.s32.totalorder (!%p316_p8), %s2961_s29, 0 }
  0x2c   : > { %s374_s19 = scalar_select %p373_p2, %s3148_s7, 2 }
  0x2e   : > { %s3152_s9 = sshll.u32 %s374_s19, 4  ;;  %s4259_s19 = smov (!%p373_p2, %s374_s19), 2 }
  0x2f   : > { %p380_p6 = scmp.lt.s32.totalorder %s3152_s9, 37  ;;  %s399_s13 = scalar_lea.vmem %s4165_s3, %s4259_s19 }
  0x30   : > { %s410_s22 = scalar_lea.vmem %s4166_s4, %s4259_s19  ;;  %422 = sbr.rel (%p2088_p9) target bundleno = 55 (0x37), region = 44 }
  0x31   : > { %s381_s20 = scalar_select %p380_p6, %s3152_s9, 37 }
  0x33   : > { %s2079_s28 = sshll.u32 %s381_s20, 3 }
  0x34   : > { %s3169_s17 = scalar_lea.vmem %s4162_s0, %s2079_s28 }
  0x35   : > { %vm423_vm0 = vcmask 257024   ;;  %v2979_v0 = vmov 0.0  }
  0x36   : > { %424 = vst.msk [vmem:[%s3171_s23] sm:$0xf] %vm423_vm0, %v2979_v0 }
  0x37 PF: > { %s2090_s2 = sshll.u32 %s3148_s7, 7  ;;  %v4180_v1 = vlaneseq  ;;  %v2980_v2 = vmov 0.0   ;;  %vm2981_vm1 = vmmov 0   ;;  %v443_v9 = vld [vmem:[%s3169_s17 + $0x78] sm:$0xff]  ;;  %vm549_vm2 = vcmask 261120   ;;  %v442_v14 = vld [vmem:[%s3169_s17 + $0x70] sm:$0xff] }
  0x38   : > { %2304 = vmatprep.subr.mxu0 %v2980_v2  ;;  %2339 = vmatprep.subr.mxu1 %v2980_v2  ;;  %v3191_v4 = vstv %s2090_s2  ;;  %v441_v16 = vld [vmem:[%s3169_s17 + $0x68] sm:$0xff]  ;;  %v440_v18 = vld [vmem:[%s3169_s17 + $0x60] sm:$0xff]  ;;  %v439_v32 = vld [vmem:[%s3169_s17 + $0x58] sm:$0xff]  ;;  %s547_s29 = sld [smem:[#allocation2]]  ;;  %p2092_p10 = scmp.ge.s32.totalorder %s2090_s2, 300 }
  0x39   : > { %v3183_v3 = vshrl.u32 %v4180_v1, 7  ;;  %2336 = vmatprep.mubr.msk.f32.mxu0 %vm2981_vm1, %v2980_v2  ;;  %2371 = vmatprep.mubr.msk.f32.mxu1 %vm2981_vm1, %v2980_v2  ;;  %v438_v37 = vld [vmem:[%s3169_s17 + $0x50] sm:$0xff]  ;;  %v437_v44 = vld [vmem:[%s3169_s17 + $0x48] sm:$0xff]  ;;  %v436_v54 = vld [vmem:[%s3169_s17 + $0x40] sm:$0xff] }
  0x3b   : > { %v460_v5 = vadd.s32 120, %v3183_v3  ;;  %v459_v6 = vadd.s32 112, %v3183_v3  ;;  %v458_v7 = vadd.s32 104, %v3183_v3  ;;  %v457_v8 = vadd.s32 96, %v3183_v3 }
  0x3c   : > { %v456_v10 = vadd.s32 88, %v3183_v3  ;;  %v455_v11 = vadd.s32 80, %v3183_v3  ;;  %v454_v12 = vadd.s32 72, %v3183_v3  ;;  %v453_v23 = vadd.s32 64, %v3183_v3 }
  0x3d   : > { %v477_v13 = vadd.s32 %v3191_v4, %v460_v5  ;;  %v476_v15 = vadd.s32 %v3191_v4, %v459_v6  ;;  %v475_v17 = vadd.s32 %v3191_v4, %v458_v7  ;;  %v474_v19 = vadd.s32 %v3191_v4, %v457_v8 }
  0x3e   : > { %v473_v20 = vadd.s32 %v3191_v4, %v456_v10  ;;  %v472_v21 = vadd.s32 %v3191_v4, %v455_v11  ;;  %v471_v22 = vadd.s32 %v3191_v4, %v454_v12  ;;  %v470_v38 = vadd.s32 %v3191_v4, %v453_v23  ;;  %v435_v10 = vld [vmem:[%s3169_s17 + $0x38] sm:$0xff] }
  0x3f   : > { %vm493_vm3 = vcmp.lt.s32.totalorder %v477_v13, 300  ;;  %vm492_vm4 = vcmp.lt.s32.totalorder %v476_v15, 300  ;;  %vm491_vm5 = vcmp.lt.s32.totalorder %v475_v17, 300  ;;  %vm490_vm6 = vcmp.lt.s32.totalorder %v474_v19, 300 }
  0x40   : > { %v3212_v24 = vsel %vm493_vm3, %v443_v9, 0.0  ;;  %v3214_v25 = vsel %vm492_vm4, %v442_v14, 0.0  ;;  %v3216_v26 = vsel %vm491_vm5, %v441_v16, 0.0  ;;  %v3218_v27 = vsel %vm490_vm6, %v440_v18, 0.0  ;;  %v434_v18 = vld [vmem:[%s3169_s17 + $0x30] sm:$0xff] }
  0x41   : > { %v599_v28 = vsel %vm549_vm2, %v3212_v24, 0  ;;  %v596_v29 = vsel %vm549_vm2, %v3214_v25, 0  ;;  %v593_v30 = vsel %vm549_vm2, %v3216_v26, 0  ;;  %v590_v31 = vsel %vm549_vm2, %v3218_v27, 0 }
  0x42   : > { %v3229_v33 = vand.u32 4294901760, %v599_v28  ;;  %v3231_v34 = vand.u32 4294901760, %v596_v29  ;;  %v3233_v35 = vand.u32 4294901760, %v593_v30  ;;  %v3235_v36 = vand.u32 4294901760, %v590_v31 }
  0x43   : > { %vm489_vm7 = vcmp.lt.s32.totalorder %v473_v20, 300  ;;  %vm488_vm8 = vcmp.lt.s32.totalorder %v472_v21, 300  ;;  %vm487_vm9 = vcmp.lt.s32.totalorder %v471_v22, 300  ;;  %vm486_vm10 = vcmp.lt.s32.totalorder %v470_v38, 300  ;;  %v433_v38 = vld [vmem:[%s3169_s17 + $0x28] sm:$0xff] }
  0x44   : > { %2305 = vmatpush3.xpose.msra.mxu0 %v3229_v33  ;;  %v3241_v39 = vsub.f32 %v599_v28, %v3229_v33  ;;  %v3244_v40 = vsub.f32 %v596_v29, %v3231_v34  ;;  %v3246_v41 = vsel %vm489_vm7, %v439_v32, 0.0  ;;  %v3249_v42 = vsub.f32 %v593_v30, %v3233_v35 }
  0x45   : > { %2306 = vmatprep.subr.mxu0 %v2980_v2  ;;  %v587_v43 = vsel %vm549_vm2, %v3246_v41, 0  ;;  %v3257_v47 = vsel %vm488_vm8, %v438_v37, 0.0  ;;  %v3260_v48 = vsub.f32 %v590_v31, %v3235_v36  ;;  %v3272_v53 = vsel %vm487_vm9, %v437_v44, 0.0 }
  0x46   : > { %v695_v45 = vand.u32 4294901760, %v3241_v39  ;;  %v4193_v46 = vand.u32 4294901760, %v3244_v40  ;;  %v4191_v49 = vand.u32 4294901760, %v3249_v42  ;;  %v3270_v52 = vand.u32 4294901760, %v587_v43 }
  0x47   : > { %v584_v55 = vsel %vm549_vm2, %v3257_v47, 0  ;;  %v4189_v57 = vand.u32 4294901760, %v3260_v48  ;;  %v581_v59 = vsel %vm549_vm2, %v3272_v53, 0  ;;  %v3284_v60 = vsel %vm486_vm10, %v436_v54, 0.0 }
  0x48   : > { %2307 = vmatpush3.xpose.msra.mxu0 %v3231_v34  ;;  %v696_v50 = vsub.f32 %v3241_v39, %v695_v45  ;;  %v703_v51 = vsub.f32 %v3244_v40, %v4193_v46  ;;  %v710_v58 = vsub.f32 %v3249_v42, %v4191_v49  ;;  %v452_v61 = vadd.s32 56, %v3183_v3 }
  0x49   : > { %2308 = vmatprep.subr.mxu0 %v2980_v2  ;;  %v3288_v63 = vand.u32 4294901760, %v584_v55  ;;  %v3291_v0 = vsub.f32 %v587_v43, %v3270_v52  ;;  %v451_v5 = vadd.s32 48, %v3183_v3  ;;  %v3298_v8 = vand.u32 4294901760, %v581_v59 }
  0x4a   : > { %v697_v56 = vand.u32 4294901760, %v696_v50  ;;  %v704_v62 = vand.u32 4294901760, %v703_v51  ;;  %v469_v6 = vadd.s32 %v3191_v4, %v452_v61  ;;  %v578_v9 = vsel %vm549_vm2, %v3284_v60, 0 }
  0x4b   : > { %v468_v7 = vadd.s32 %v3191_v4, %v451_v5  ;;  %v450_v11 = vadd.s32 40, %v3183_v3  ;;  %v711_v12 = vand.u32 4294901760, %v710_v58  ;;  %v717_v13 = vsub.f32 %v3260_v48, %v4189_v57  ;;  %v432_v58 = vld [vmem:[%s3169_s17 + $0x20] sm:$0xff] }
  0x4c   : > { %2309 = vmatpush3.xpose.msra.mxu0 %v3233_v35  ;;  %2340 = vmatpush3.xpose.msra.mxu1 %v697_v56  ;;  %vm485_vm11 = vcmp.lt.s32.totalorder %v469_v6, 300  ;;  %v4188_v14 = vand.u32 4294901760, %v3291_v0  ;;  %v3310_v15 = vsub.f32 %v584_v55, %v3288_v63  ;;  %v3314_v16 = vand.u32 4294901760, %v578_v9 }
  0x4d   : > { %2310 = vmatprep.subr.mxu0 %v2980_v2  ;;  %2341 = vmatprep.subr.mxu1 %v2980_v2  ;;  %v3316_v17 = vsel %vm485_vm11, %v435_v10, 0.0  ;;  %vm484_vm12 = vcmp.lt.s32.totalorder %v468_v7, 300  ;;  %v449_v19 = vadd.s32 32, %v3183_v3  ;;  %v3321_v20 = vsub.f32 %v581_v59, %v3298_v8 }
  0x4e   : > { %v467_v21 = vadd.s32 %v3191_v4, %v450_v11  ;;  %v718_v22 = vand.u32 4294901760, %v717_v13  ;;  %v724_v23 = vsub.f32 %v3291_v0, %v4188_v14  ;;  %v4186_v28 = vand.u32 4294901760, %v3310_v15  ;;  %v431_v13 = vld [vmem:[%s3169_s17 + $0x18] sm:$0xff] }
  0x4f   : > { %v575_v29 = vsel %vm549_vm2, %v3316_v17, 0  ;;  %v3333_v30 = vsel %vm484_vm12, %v434_v18, 0.0  ;;  %v3336_v31 = vsub.f32 %v578_v9, %v3314_v16  ;;  %v466_v32 = vadd.s32 %v3191_v4, %v449_v19 }
  0x50   : > { %2311 = vmatpush3.xpose.msra.mxu0 %v3235_v36  ;;  %2342 = vmatpush3.xpose.msra.mxu1 %v704_v62  ;;  %v4185_v37 = vand.u32 4294901760, %v3321_v20  ;;  %vm483_vm13 = vcmp.lt.s32.totalorder %v467_v21, 300  ;;  %v448_v43 = vadd.s32 24, %v3183_v3  ;;  %v725_v44 = vand.u32 4294901760, %v724_v23 }
  0x51   : > { %2312 = vmatprep.subr.mxu0 %v2980_v2  ;;  %2343 = vmatprep.subr.mxu1 %v2980_v2  ;;  %v731_v50 = vsub.f32 %v3310_v15, %v4186_v28  ;;  %v3346_v51 = vand.u32 4294901760, %v575_v29  ;;  %v572_v54 = vsel %vm549_vm2, %v3333_v30, 0  ;;  %v4183_v55 = vand.u32 4294901760, %v3336_v31 }
  0x52   : > { %v3353_v56 = vsel %vm483_vm13, %v433_v38, 0.0  ;;  %vm482_vm14 = vcmp.lt.s32.totalorder %v466_v32, 300  ;;  %v3356_v59 = vand.u32 4294901760, %v572_v54  ;;  %v465_v61 = vadd.s32 %v3191_v4, %v448_v43 }
  0x53   : > { %v447_v62 = vadd.s32 16, %v3183_v3  ;;  %v732_v5 = vand.u32 4294901760, %v731_v50  ;;  %v738_v6 = vsub.f32 %v3321_v20, %v4185_v37  ;;  %v3365_v7 = vsub.f32 %v575_v29, %v3346_v51 }
  0x54   : > { %2313 = vmatpush3.xpose.msra.mxu0 %v3270_v52  ;;  %2344 = vmatpush3.xpose.msra.mxu1 %v711_v12  ;;  %v569_v9 = vsel %vm549_vm2, %v3353_v56, 0  ;;  %v3371_v10 = vsel %vm482_vm14, %v432_v58, 0.0  ;;  %v745_v11 = vsub.f32 %v3336_v31, %v4183_v55  ;;  %v3377_v12 = vsub.f32 %v572_v54, %v3356_v59 }
  0x55   : > { %2314 = vmatprep.subr.mxu0 %v2980_v2  ;;  %2345 = vmatprep.subr.mxu1 %v2980_v2  ;;  %vm481_vm15 = vcmp.lt.s32.totalorder %v465_v61, 300  ;;  %v464_v18 = vadd.s32 %v3191_v4, %v447_v62  ;;  %v446_v19 = vadd.s32 8, %v3183_v3  ;;  %v739_v21 = vand.u32 4294901760, %v738_v6 }
  0x56   : > { %v4182_v23 = vand.u32 4294901760, %v3365_v7  ;;  %v566_v29 = vsel %vm549_vm2, %v3371_v10, 0  ;;  %v3390_v32 = vsel %vm481_vm15, %v431_v13, 0.0  ;;  %v4181_v43 = vand.u32 4294901760, %v3377_v12  ;;  %v429_v13 = vld [vmem:[%s3169_s17 + $0x8] sm:$0xff] }
  0x57   : > { %v3392_v38 = vand.u32 4294901760, %v566_v29  ;;  %vm480_vm0 = vcmp.lt.s32.totalorder %v464_v18, 300  ;;  %v463_v50 = vadd.s32 %v3191_v4, %v446_v19  ;;  %v746_v54 = vand.u32 4294901760, %v745_v11 }
  0x58   : > { %2315 = vmatpush3.xpose.msra.mxu0 %v3288_v63  ;;  %2346 = vmatpush3.xpose.msra.mxu1 %v718_v22  ;;  %v3383_v22 = vand.u32 4294901760, %v569_v9  ;;  %v752_v58 = vsub.f32 %v3365_v7, %v4182_v23  ;;  %v563_v62 = vsel %vm549_vm2, %v3390_v32, 0  ;;  %v759_v6 = vsub.f32 %v3377_v12, %v4181_v43 }
  0x59   : > { %2316 = vmatprep.subr.mxu0 %v2980_v2  ;;  %2347 = vmatprep.subr.mxu1 %v2980_v2  ;;  %v3414_v11 = vsub.f32 %v566_v29, %v3392_v38  ;;  %vm479_vm3 = vcmp.lt.s32.totalorder %v463_v50, 300  ;;  %v3420_v19 = vand.u32 4294901760, %v563_v62 }
  0x5a   : > { %v3402_v61 = vsub.f32 %v569_v9, %v3383_v22  ;;  %v462_v9 = vadd.s32 %v3191_v4, %v3183_v3  ;;  %v753_v18 = vand.u32 4294901760, %v752_v58  ;;  %v3430_v50 = vsel %vm479_vm3, %v429_v13, 0.0  ;;  %v428_v58 = vld [vmem:[%s3169_s17] sm:$0xff] }
  0x5b   : > { %v760_v1 = vand.u32 4294901760, %v759_v6  ;;  %v3441_v55 = vsub.f32 %v563_v62, %v3420_v19  ;;  %v557_v6 = vsel %vm549_vm2, %v3430_v50, 0 }
  0x5c   : > { %2317 = vmatpush3.xpose.msra.mxu0 %v3298_v8  ;;  %2348 = vmatpush3.xpose.msra.mxu1 %v725_v44  ;;  %v430_v44 = vld [vmem:[%s3169_s17 + $0x10] sm:$0xff]  ;;  %vm478_vm4 = vcmp.lt.s32.totalorder %v462_v9, 300 }
  0x5d   : > { %2318 = vmatprep.subr.mxu0 %v2980_v2  ;;  %2349 = vmatprep.subr.mxu1 %v2980_v2  ;;  %v3448_v9 = vsel %vm478_vm4, %v428_v58, 0.0  ;;  %v4190_v37 = vand.u32 4294901760, %v3441_v55 }
  0x5e   : > { %v554_v58 = vsel %vm549_vm2, %v3448_v9, 0 }
  0x60   : > { %2319 = vmatpush3.xpose.msra.mxu0 %v3314_v16  ;;  %2350 = vmatpush3.xpose.msra.mxu1 %v732_v5  ;;  %v3408_v5 = vsel %vm480_vm0, %v430_v44, 0.0  ;;  %v542_v44 = vld [vmem:[%s4163_s1] sm:$0x1] }
  0x61   : > { %2320 = vmatprep.subr.mxu0 %v2980_v2  ;;  %2351 = vmatprep.subr.mxu1 %v2980_v2  ;;  %v560_v29 = vsel %vm549_vm2, %v3408_v5, 0  ;;  %v551_v13 = vsel %vm549_vm2, %v542_v44, 0  ;;  %v3456_v44 = vand.u32 4294901760, %v557_v6 }
  0x62   : > { %v3438_v23 = vand.u32 4294901760, %v560_v29 }
  0x63   : > { %v3477_v57 = vsub.f32 %v557_v6, %v3456_v44 }
  0x64   : > { %2321 = vmatpush3.xpose.msra.mxu0 %v3346_v51  ;;  %2352 = vmatpush3.xpose.msra.mxu1 %v739_v21  ;;  %v4184_v21 = vand.u32 4294901760, %v3402_v61  ;;  %v3460_v28 = vsub.f32 %v560_v29, %v3438_v23 }
  0x65   : > { %2322 = vmatprep.subr.mxu0 %v2980_v2  ;;  %2353 = vmatprep.subr.mxu1 %v2980_v2 }
  0x66   : > { %v766_v43 = vsub.f32 %v3402_v61, %v4184_v21  ;;  %v3453_v21 = vand.u32 4294901760, %v551_v13  ;;  %v4192_v29 = vand.u32 4294901760, %v3460_v28 }
  0x68   : > { %2323 = vmatpush3.xpose.msra.mxu0 %v3356_v59  ;;  %2354 = vmatpush3.xpose.msra.mxu1 %v746_v54  ;;  %v4187_v54 = vand.u32 4294901760, %v3414_v11  ;;  %v767_v62 = vand.u32 4294901760, %v766_v43  ;;  %v3467_v14 = vsub.f32 %v551_v13, %v3453_v21  ;;  %v3473_v43 = vand.u32 4294901760, %v554_v58 }
  0x69   : > { %2324 = vmatprep.subr.mxu0 %v2980_v2  ;;  %2355 = vmatprep.subr.mxu1 %v2980_v2 }
  0x6a   : > { %v684_v13 = vand.u32 4294901760, %v3467_v14  ;;  %v3488_v49 = vsub.f32 %v554_v58, %v3473_v43 }
  0x6c   : > { %2325 = vmatpush3.xpose.msra.mxu0 %v3383_v22  ;;  %2356 = vmatpush3.xpose.msra.mxu1 %v753_v18  ;;  %v773_v18 = vsub.f32 %v3414_v11, %v4187_v54  ;;  %v685_v6 = vsub.f32 %v3467_v14, %v684_v13 }
  0x6d   : > { %2326 = vmatprep.subr.mxu0 %v2980_v2  ;;  %2357 = vmatprep.subr.mxu1 %v2980_v2 }
  0x6e   : > { %v774_v54 = vand.u32 4294901760, %v773_v18  ;;  %v686_v58 = vand.u32 4294901760, %v685_v6 }
  0x70   : > { %2327 = vmatpush3.xpose.msra.mxu0 %v3392_v38  ;;  %2358 = vmatpush3.xpose.msra.mxu1 %v760_v1  ;;  %v780_v1 = vsub.f32 %v3441_v55, %v4190_v37  ;;  %v793_v37 = vand.u32 4294901760, %v3477_v57 }
  0x71   : > { %2328 = vmatprep.subr.mxu0 %v2980_v2  ;;  %2359 = vmatprep.subr.mxu1 %v2980_v2 }
  0x72   : > { %v781_v18 = vand.u32 4294901760, %v780_v1  ;;  %v794_v1 = vsub.f32 %v3477_v57, %v793_v37 }
  0x74   : > { %2329 = vmatpush3.xpose.msra.mxu0 %v3420_v19  ;;  %2360 = vmatpush3.xpose.msra.mxu1 %v767_v62  ;;  %v787_v62 = vsub.f32 %v3460_v28, %v4192_v29  ;;  %v800_v29 = vand.u32 4294901760, %v3488_v49  ;;  %v795_v46 = vand.u32 4294901760, %v794_v1 }
  0x75   : > { %2330 = vmatprep.subr.mxu0 %v2980_v2  ;;  %2361 = vmatprep.subr.mxu1 %v2980_v2 }
  0x78   : > { %2331 = vmatpush3.xpose.msra.mxu0 %v3438_v23  ;;  %2362 = vmatpush3.xpose.msra.mxu1 %v774_v54  ;;  %v788_v54 = vand.u32 4294901760, %v787_v62 }
  0x79   : > { %2332 = vmatprep.subr.mxu0 %v2980_v2  ;;  %2363 = vmatprep.subr.mxu1 %v2980_v2 }
  0x7c   : > { %2333 = vmatpush3.xpose.msra.mxu0 %v3456_v44  ;;  %2364 = vmatpush3.xpose.msra.mxu1 %v781_v18  ;;  %v801_v18 = vsub.f32 %v3488_v49, %v800_v29 }
  0x7d   : > { %2334 = vmatprep.subr.mxu0 %v2980_v2  ;;  %2365 = vmatprep.subr.mxu1 %v2980_v2 }
  0x7e   : > { %v802_v62 = vand.u32 4294901760, %v801_v18 }
  0x80   : > { %2335 = vmatpush3.xpose.msra.mxu0 %v3473_v43  ;;  %2366 = vmatpush3.xpose.msra.mxu1 %v788_v54 }
  0x81   : > { %2367 = vmatprep.subr.mxu1 %v2980_v2  ;;  %2374 = vmatprep.subr.mxu0 %v2980_v2 }
  0x83   : > { %2337 = vmatmul.mubr.f32.vlgmr.msra.gmra.mxu0 %v686_v58 }
  0x84   : > { %2368 = vmatpush3.xpose.msra.mxu1 %v795_v46  ;;  %2375 = vmatpush3.xpose.msra.mxu0 %v3241_v39  ;;  %v4213_v46 = vand.u32 4294901760, %v3244_v40  ;;  %v4214_v39 = vand.u32 4294901760, %v3249_v42 }
  0x85   : > { %2369 = vmatprep.subr.mxu1 %v2980_v2  ;;  %2376 = vmatprep.subr.mxu0 %v2980_v2 }
  0x86   : > { %2406 = vmatprep.mubr.msk.f32.mxu0 %vm2981_vm1, %v2980_v2 }
  0x88   : > { %2370 = vmatpush3.xpose.msra.mxu1 %v802_v62  ;;  %2377 = vmatpush3.xpose.msra.mxu0 %v3244_v40  ;;  %v4215_v40 = vand.u32 4294901760, %v3260_v48 }
  0x89   : > { %2378 = vmatprep.subr.mxu0 %v2980_v2  ;;  %2409 = vmatprep.subr.mxu1 %v2980_v2 }
  0x8b   : > { %2372 = vmatmul.mubr.f32.vlgmr.msra.gmra.mxu1 %v3453_v21 }
  0x8c   : > { %2379 = vmatpush3.xpose.msra.mxu0 %v3249_v42  ;;  %2410 = vmatpush3.xpose.msra.mxu1 %v3229_v33  ;;  %v4216_v42 = vand.u32 4294901760, %v3291_v0 }
  0x8d   : > { %2380 = vmatprep.subr.mxu0 %v2980_v2  ;;  %2411 = vmatprep.subr.mxu1 %v2980_v2 }
  0x8e   : > { %2441 = vmatprep.mubr.msk.f32.mxu1 %vm2981_vm1, %v2980_v2 }
  0x90   : > { %2381 = vmatpush3.xpose.msra.mxu0 %v3260_v48  ;;  %2412 = vmatpush3.xpose.msra.mxu1 %v3231_v34  ;;  %v4222_v48 = vand.u32 4294901760, %v3402_v61 }
  0x91   : > { %2382 = vmatprep.subr.mxu0 %v2980_v2  ;;  %2413 = vmatprep.subr.mxu1 %v2980_v2 }
  0x94   : > { %2383 = vmatpush3.xpose.msra.mxu0 %v3291_v0  ;;  %2414 = vmatpush3.xpose.msra.mxu1 %v3233_v35  ;;  %v4225_v0 = vand.u32 4294901760, %v3460_v28 }
  0x95   : > { %2384 = vmatprep.subr.mxu0 %v2980_v2  ;;  %2415 = vmatprep.subr.mxu1 %v2980_v2 }
  0x98   : > { %2385 = vmatpush3.xpose.msra.mxu0 %v3310_v15  ;;  %2416 = vmatpush3.xpose.msra.mxu1 %v3235_v36 }
  0x99   : > { %2386 = vmatprep.subr.mxu0 %v2980_v2  ;;  %2417 = vmatprep.subr.mxu1 %v2980_v2 }
  0x9c   : > { %2387 = vmatpush3.xpose.msra.mxu0 %v3321_v20  ;;  %2418 = vmatpush3.xpose.msra.mxu1 %v3270_v52 }
  0x9d   : > { %2388 = vmatprep.subr.mxu0 %v2980_v2  ;;  %2419 = vmatprep.subr.mxu1 %v2980_v2 }
  0xa0   : > { %2389 = vmatpush3.xpose.msra.mxu0 %v3336_v31  ;;  %2420 = vmatpush3.xpose.msra.mxu1 %v3288_v63 }
  0xa1   : > { %2390 = vmatprep.subr.mxu0 %v2980_v2  ;;  %2421 = vmatprep.subr.mxu1 %v2980_v2 }
  0xa4   : > { %2391 = vmatpush3.xpose.msra.mxu0 %v3365_v7  ;;  %2422 = vmatpush3.xpose.msra.mxu1 %v3298_v8 }
  0xa5   : > { %2392 = vmatprep.subr.mxu0 %v2980_v2  ;;  %2423 = vmatprep.subr.mxu1 %v2980_v2 }
  0xa8   : > { %2393 = vmatpush3.xpose.msra.mxu0 %v3377_v12  ;;  %2424 = vmatpush3.xpose.msra.mxu1 %v3314_v16 }
  0xa9   : > { %2394 = vmatprep.subr.mxu0 %v2980_v2  ;;  %2425 = vmatprep.subr.mxu1 %v2980_v2 }
  0xac   : > { %2395 = vmatpush3.xpose.msra.mxu0 %v3402_v61  ;;  %2426 = vmatpush3.xpose.msra.mxu1 %v3346_v51 }
  0xad   : > { %2396 = vmatprep.subr.mxu0 %v2980_v2  ;;  %2427 = vmatprep.subr.mxu1 %v2980_v2 }
  0xb0   : > { %2397 = vmatpush3.xpose.msra.mxu0 %v3414_v11  ;;  %2428 = vmatpush3.xpose.msra.mxu1 %v3356_v59 }
  0xb1   : > { %2398 = vmatprep.subr.mxu0 %v2980_v2  ;;  %2429 = vmatprep.subr.mxu1 %v2980_v2 }
  0xb4   : > { %2399 = vmatpush3.xpose.msra.mxu0 %v3441_v55  ;;  %2430 = vmatpush3.xpose.msra.mxu1 %v3383_v22 }
  0xb5   : > { %2400 = vmatprep.subr.mxu0 %v2980_v2  ;;  %2431 = vmatprep.subr.mxu1 %v2980_v2 }
  0xb8   : > { %2401 = vmatpush3.xpose.msra.mxu0 %v3460_v28  ;;  %2432 = vmatpush3.xpose.msra.mxu1 %v3392_v38 }
  0xb9   : > { %2402 = vmatprep.subr.mxu0 %v2980_v2  ;;  %2433 = vmatprep.subr.mxu1 %v2980_v2 }
  0xbc   : > { %2403 = vmatpush3.xpose.msra.mxu0 %v3477_v57  ;;  %2434 = vmatpush3.xpose.msra.mxu1 %v3420_v19 }
  0xbd   : > { %2404 = vmatprep.subr.mxu0 %v2980_v2  ;;  %2435 = vmatprep.subr.mxu1 %v2980_v2 }
  0xc0   : > { %2405 = vmatpush3.xpose.msra.mxu0 %v3488_v49  ;;  %2436 = vmatpush3.xpose.msra.mxu1 %v3438_v23 }
  0xc1   : > { %2437 = vmatprep.subr.mxu1 %v2980_v2  ;;  %2444 = vmatprep.subr.mxu0 %v2980_v2 }
  0xc3   : > { %2407 = vmatmul.mubr.f32.vlgmr.msra.gmra.mxu0 %v3467_v14 }
  0xc4   : > { %2438 = vmatpush3.xpose.msra.mxu1 %v3456_v44  ;;  %2445 = vmatpush3.xpose.msra.mxu0 %v695_v45  ;;  %v4221_v45 = vand.u32 4294901760, %v3377_v12 }
  0xc5   : > { %2439 = vmatprep.subr.mxu1 %v2980_v2  ;;  %2446 = vmatprep.subr.mxu0 %v2980_v2 }
  0xc6   : > { %2476 = vmatprep.mubr.msk.f32.mxu0 %vm2981_vm1, %v2980_v2 }
  0xc8   : > { %2440 = vmatpush3.xpose.msra.mxu1 %v3473_v43  ;;  %2447 = vmatpush3.xpose.msra.mxu0 %v4213_v46 }
  0xc9   : > { %2448 = vmatprep.subr.mxu0 %v2980_v2  ;;  %2479 = vmatprep.subr.mxu1 %v2980_v2 }
  0xcb   : > { %2442 = vmatmul.mubr.f32.vlgmr.msra.gmra.mxu1 %v684_v13  ;;  %v1248_v13 = vld [vmem:[%s399_s13] sm:$0x1] }
  0xcc   : > { %2449 = vmatpush3.xpose.msra.mxu0 %v4214_v39  ;;  %2480 = vmatpush3.xpose.msra.mxu1 %v3229_v33  ;;  %v4217_v33 = vand.u32 4294901760, %v3310_v15 }
  0xcd   : > { %2450 = vmatprep.subr.mxu0 %v2980_v2  ;;  %2481 = vmatprep.subr.mxu1 %v2980_v2 }
  0xce   : > { %2511 = vmatprep.mubr.msk.f32.mxu1 %vm2981_vm1, %v2980_v2 }
  0xd0   : > { %2451 = vmatpush3.xpose.msra.mxu0 %v4215_v40  ;;  %2482 = vmatpush3.xpose.msra.mxu1 %v3231_v34  ;;  %v4218_v34 = vand.u32 4294901760, %v3321_v20 }
  0xd1   : > { %2452 = vmatprep.subr.mxu0 %v2980_v2  ;;  %2483 = vmatprep.subr.mxu1 %v2980_v2 }
  0xd4   : > { %2453 = vmatpush3.xpose.msra.mxu0 %v4216_v42  ;;  %2484 = vmatpush3.xpose.msra.mxu1 %v3233_v35  ;;  %v4219_v35 = vand.u32 4294901760, %v3336_v31 }
  0xd5   : > { %2454 = vmatprep.subr.mxu0 %v2980_v2  ;;  %2485 = vmatprep.subr.mxu1 %v2980_v2 }
  0xd8   : > { %2455 = vmatpush3.xpose.msra.mxu0 %v4217_v33  ;;  %2486 = vmatpush3.xpose.msra.mxu1 %v3235_v36  ;;  %v4220_v36 = vand.u32 4294901760, %v3365_v7 }
  0xd9   : > { %2456 = vmatprep.subr.mxu0 %v2980_v2  ;;  %2487 = vmatprep.subr.mxu1 %v2980_v2 }
  0xdc   : > { %2457 = vmatpush3.xpose.msra.mxu0 %v4218_v34  ;;  %2488 = vmatpush3.xpose.msra.mxu1 %v3270_v52  ;;  %v4223_v52 = vand.u32 4294901760, %v3414_v11 }
  0xdd   : > { %2458 = vmatprep.subr.mxu0 %v2980_v2  ;;  %2489 = vmatprep.subr.mxu1 %v2980_v2 }
  0xe0   : > { %2459 = vmatpush3.xpose.msra.mxu0 %v4219_v35  ;;  %2490 = vmatpush3.xpose.msra.mxu1 %v3288_v63  ;;  %v4224_v63 = vand.u32 4294901760, %v3441_v55 }
  0xe1   : > { %2460 = vmatprep.subr.mxu0 %v2980_v2  ;;  %2491 = vmatprep.subr.mxu1 %v2980_v2 }
  0xe4   : > { %2461 = vmatpush3.xpose.msra.mxu0 %v4220_v36  ;;  %2492 = vmatpush3.xpose.msra.mxu1 %v3298_v8  ;;  %v548_v8 = vstv %s547_s29 }
  0xe5   : > { %2462 = vmatprep.subr.mxu0 %v2980_v2  ;;  %2493 = vmatprep.subr.mxu1 %v2980_v2 }
  0xe8   : > { %2463 = vmatpush3.xpose.msra.mxu0 %v4221_v45  ;;  %2494 = vmatpush3.xpose.msra.mxu1 %v3314_v16 }
  0xe9   : > { %2464 = vmatprep.subr.mxu0 %v2980_v2  ;;  %2495 = vmatprep.subr.mxu1 %v2980_v2 }
  0xec   : > { %2465 = vmatpush3.xpose.msra.mxu0 %v4222_v48  ;;  %2496 = vmatpush3.xpose.msra.mxu1 %v3346_v51 }
  0xed   : > { %2466 = vmatprep.subr.mxu0 %v2980_v2  ;;  %2497 = vmatprep.subr.mxu1 %v2980_v2 }
  0xf0   : > { %2467 = vmatpush3.xpose.msra.mxu0 %v4223_v52  ;;  %2498 = vmatpush3.xpose.msra.mxu1 %v3356_v59 }
  0xf1   : > { %2468 = vmatprep.subr.mxu0 %v2980_v2  ;;  %2499 = vmatprep.subr.mxu1 %v2980_v2 }
  0xf4   : > { %2469 = vmatpush3.xpose.msra.mxu0 %v4224_v63  ;;  %2500 = vmatpush3.xpose.msra.mxu1 %v3383_v22 }
  0xf5   : > { %2470 = vmatprep.subr.mxu0 %v2980_v2  ;;  %2501 = vmatprep.subr.mxu1 %v2980_v2 }
  0xf8   : > { %2471 = vmatpush3.xpose.msra.mxu0 %v4225_v0  ;;  %2502 = vmatpush3.xpose.msra.mxu1 %v3392_v38 }
  0xf9   : > { %2472 = vmatprep.subr.mxu0 %v2980_v2  ;;  %2503 = vmatprep.subr.mxu1 %v2980_v2 }
  0xfc   : > { %2473 = vmatpush3.xpose.msra.mxu0 %v793_v37  ;;  %2504 = vmatpush3.xpose.msra.mxu1 %v3420_v19 }
  0xfd   : > { %2474 = vmatprep.subr.mxu0 %v2980_v2  ;;  %2505 = vmatprep.subr.mxu1 %v2980_v2 }
 0x100   : > { %2475 = vmatpush3.xpose.msra.mxu0 %v800_v29  ;;  %2506 = vmatpush3.xpose.msra.mxu1 %v3438_v23 }
 0x101   : > { %2507 = vmatprep.subr.mxu1 %v2980_v2 }
 0x103   : > { %2477 = vmatmul.mubr.f32.vlgmr.msra.gmra.mxu0 %v3453_v21 }
 0x104   : > { %2508 = vmatpush3.xpose.msra.mxu1 %v3456_v44  ;;  %v4226_v44 = vlaneseq }
 0x105   : > { %2509 = vmatprep.subr.mxu1 %v2980_v2 }
 0x108   : > { %2510 = vmatpush3.xpose.msra.mxu1 %v3473_v43  ;;  %v544_v43 = vand.u32 127, %v4226_v44 }
 0x10a   : > { %v545_v29 = vadd.s32 %v544_v43, %v3191_v4 }
 0x10b   : > { %2512 = vmatmul.mubr.f32.vlgmr.msra.gmra.mxu1 %v3453_v21 }
 0x10c   : > { %vm546_vm2 = vcmp.lt.s32.totalorder %v545_v29, 300 }
 0x143   : > { %v688_v57 = vpop.f32.mrf.mxu0 }
 0x144   : > { %v689_v49 = vadd.f32 %v688_v57, %v548_v8 }
 0x145   : > { %v2338_v14 = vpop.f32.mrf.mxu0 }
 0x14b   : > { %v839_v15 = vpop.f32.mrf.mxu1 }
 0x14c   : > { %v840_v16 = vadd.f32 %v839_v15, %v689_v49 }
 0x14d   : > { %v2373_v20 = vpop.f32.mrf.mxu1 }
 0x183   : > { %v943_v28 = vpop.f32.mrf.mxu0 }
 0x184   : > { %v944_v31 = vadd.f32 %v943_v28, %v840_v16 }
 0x185   : > { %v2408_v37 = vpop.f32.mrf.mxu0 }
 0x18b   : > { %v1032_v51 = vpop.f32.mrf.mxu1 }
 0x18c   : > { %v1033_v12 = vadd.f32 %v1032_v51, %v944_v31 }
 0x18d   : > { %v2443_v55 = vpop.f32.mrf.mxu1 }
 0x1c3   : > { %v1151_v59 = vpop.f32.mrf.mxu0 }
 0x1c4   : > { %v1152_v22 = vadd.f32 %v1151_v59, %v1033_v12 }
 0x1c5   : > { %v2478_v7 = vpop.f32.mrf.mxu0 }
 0x1cb   : > { %v1238_v23 = vpop.f32.mrf.mxu1 }
 0x1cc   : > { %v1239_v38 = vadd.f32 %v1238_v23, %v1152_v22 }
 0x1cd   : > { %v2513_v61 = vpop.f32.mrf.mxu1 }
 0x1ce   : > { %v2091_v11 = vmul.f32 -1.442695, %v1239_v38 }
 0x1d0   : > { %2827 = vpow2.f32 %v2091_v11 }
 0x1dd   : > { %v2828_v19 = vpop.eup %2827 }
 0x1de   : > { %v1245_v21 = vadd.f32 1.0, %v2828_v19 }
 0x1e0   : > { %2829 = vrcp.f32 %v1245_v21 }
 0x1ec   : > { %1254 = sbr.rel (%p2092_p10) target bundleno = 498 (0x1f2), region = 48 }
 0x1ed   : > { %v2830_v6 = vpop.eup %2829 }
 0x1ee   : > { %v1249_v54 = vmul.f32 %v2830_v6, %v1248_v13 }
 0x1f0   : > { %v3673_v1 = vsel %vm546_vm2, %v1249_v54, 0.0 }
 0x1f1   : > { %1255 = vst [vmem:[%s3175_s26] sm:$0x1] %v3673_v1 }
 0x1f2 PF: > { %2514 = vmatprep.subr.mxu0 %v2980_v2  ;;  %v3681_v4 = vand.u32 4294901760, %v3212_v24  ;;  %v3684_v58 = vand.u32 4294901760, %v3214_v25  ;;  %v3687_v18 = vand.u32 4294901760, %v3216_v26  ;;  %v3690_v62 = vand.u32 4294901760, %v3218_v27  ;;  %2549 = vmatprep.subr.mxu1 %v2980_v2  ;;  %v2093_v55 = vld [vmem:[%s410_s22] ss:$0 sm:$0xff]  ;;  %s1945_s13 = scalar_lea.hbm %s4168_s6, %s3152_s9 }
 0x1f3   : > { %v3694_v46 = vand.u32 4294901760, %v3246_v41  ;;  %v3697_v39 = vand.u32 4294901760, %v3257_v47  ;;  %v3700_v40 = vand.u32 4294901760, %v3272_v53  ;;  %2546 = vmatprep.mubr.msk.f32.mxu0 %vm2981_vm1, %v2980_v2  ;;  %2581 = vmatprep.mubr.msk.f32.mxu1 %vm2981_vm1, %v2980_v2  ;;  %v3739_v48 = vand.u32 4294901760, %v3284_v60  ;;  %s1947_s15 = sshll.u32 %s3175_s26, 4  ;;  %s4227_s19 = sand.u32 1, %s2941_s24   ;;  %s1948_s15 = int_to_ptr.vmem [resolvable:$true] %s1947_s15 }
 0x1f4   : > { %2515 = vmatpush3.msra.mxu0 %v3681_v4  ;;  %v3709_v42 = vsub.f32 %v3212_v24, %v3681_v4  ;;  %v3713_v33 = vsub.f32 %v3214_v25, %v3684_v58  ;;  %v3717_v34 = vsub.f32 %v3216_v26, %v3687_v18  ;;  %v3721_v35 = vsub.f32 %v3218_v27, %v3690_v62  ;;  %s1918_s20 = scalar_lea.sflag [#allocation6], %s4227_s19  ;;  %s2831_s16 = scalar_lea.vmem %s1948_s15, 16 }
 0x1f5   : > { %2516 = vmatprep.subr.mxu0 %v2980_v2  ;;  %v3726_v36 = vsub.f32 %v3246_v41, %v3694_v46  ;;  %v3730_v24 = vsub.f32 %v3257_v47, %v3697_v39  ;;  %v3742_v41 = vand.u32 4294901760, %v3316_v17  ;;  %v3746_v47 = vsub.f32 %v3272_v53, %v3700_v40  ;;  %p2832_p11 = scmp.ne.s32.totalorder %s1948_s15, %s2831_s16  ;;  %s2982_s11 = smov [#allocation5]  }
 0x1f6   : > { %2517 = vmatpush3.msra.mxu0 %v3684_v58  ;;  %v1362_v25 = vand.u32 4294901760, %v3709_v42  ;;  %v1369_v26 = vand.u32 4294901760, %v3713_v33  ;;  %v1376_v45 = vand.u32 4294901760, %v3717_v34  ;;  %v1383_v27 = vand.u32 4294901760, %v3721_v35  ;;  %s2835_s2 = sshll.u32 %s2982_s11, 4  ;;  %s2836_s2 = int_to_ptr.vmem [resolvable:$false] %s2835_s2 }
 0x1f7   : > { %2518 = vmatprep.subr.mxu0 %v2980_v2  ;;  %v1390_v57 = vand.u32 4294901760, %v3726_v36  ;;  %v3761_v53 = vand.u32 4294901760, %v3333_v30  ;;  %v1397_v15 = vand.u32 4294901760, %v3730_v24  ;;  %v3770_v16 = vand.u32 4294901760, %v3353_v56  ;;  %p2833_p12 = pnand %p2832_p11, %p3126_p13  ;;  %s2837_s25 = scalar_lea.vmem %s2836_s2, 32 }
 0x1f8   : > { %2519 = vmatpush3.msra.mxu0 %v3687_v18  ;;  %v1363_v52 = vsub.f32 %v3709_v42, %v1362_v25  ;;  %v1370_v63 = vsub.f32 %v3713_v33, %v1369_v26  ;;  %v1377_v0 = vsub.f32 %v3717_v34, %v1376_v45  ;;  %v1384_v49 = vsub.f32 %v3721_v35, %v1383_v27  ;;  %p2838_p4 = scmp.lt.s32.totalorder %s1948_s15, %s2836_s2  ;;  %p2839_p5 = scmp.lt.s32.totalorder %s2837_s25, %s2831_s16 }
 0x1f9   : > { %2520 = vmatprep.subr.mxu0 %v2980_v2  ;;  %v1404_v20 = vand.u32 4294901760, %v3746_v47  ;;  %v3775_v28 = vsub.f32 %v3284_v60, %v3739_v48  ;;  %v1391_v37 = vsub.f32 %v3726_v36, %v1390_v57  ;;  %v3783_v51 = vsub.f32 %v3316_v17, %v3742_v41  ;;  %p2834_p0 = pneg %p2833_p12 }
 0x1fa   : > { %2521 = vmatpush3.msra.mxu0 %v3690_v62  ;;  %v1364_v8 = vand.u32 4294901760, %v1363_v52  ;;  %v1371_v14 = vand.u32 4294901760, %v1370_v63  ;;  %v1378_v31 = vand.u32 4294901760, %v1377_v0  ;;  %v3789_v60 = vsub.f32 %v3333_v30, %v3761_v53  ;;  %p2840_p8 = por %p2839_p5, %p2838_p4 }
 0x1fb   : > { %2522 = vmatprep.subr.mxu0 %v2980_v2  ;;  %v1385_v59 = vand.u32 4294901760, %v1384_v49  ;;  %v1398_v17 = vsub.f32 %v3730_v24, %v1397_v15  ;;  %v3801_v7 = vand.u32 4294901760, %v3371_v10  ;;  %v1411_v12 = vand.u32 4294901760, %v3775_v28 }
 0x1fc   : > { %2523 = vmatpush3.msra.mxu0 %v3694_v46  ;;  %2550 = vmatpush3.msra.mxu1 %v1364_v8  ;;  %v1405_v30 = vsub.f32 %v3746_v47, %v1404_v20  ;;  %v3811_v22 = vsub.f32 %v3353_v56, %v3770_v16  ;;  %v1264_v23 = vsub.s32 0, %v3183_v3  ;;  %v1392_v38 = vand.u32 4294901760, %v1391_v37  ;;  %p2841_p2 = pnand %p2840_p8, %p2834_p0 }
 0x1fd   : > { %2524 = vmatprep.subr.mxu0 %v2980_v2  ;;  %2551 = vmatprep.subr.mxu1 %v2980_v2  ;;  %v3816_v61 = vand.u32 4294901760, %v3390_v32  ;;  %v1418_v11 = vand.u32 4294901760, %v3783_v51  ;;  %vm1261_vm5 = vcmp.eq.s32.totalorder %v3183_v3, %v2093_v55  ;;  %v1425_v56 = vand.u32 4294901760, %v3789_v60 }
 0x1fe   : > { %2525 = vmatpush3.msra.mxu0 %v3697_v39  ;;  %2552 = vmatpush3.msra.mxu1 %v1371_v14  ;;  %v1265_v19 = vrot.slane %v3673_v1, %v1264_v23  ;;  %v1399_v21 = vand.u32 4294901760, %v1398_v17  ;;  %v1412_v44 = vsub.f32 %v3775_v28, %v1411_v12  ;;  %v3829_v43 = vand.u32 4294901760, %v3408_v5 }
 0x1ff   : > { %2526 = vmatprep.subr.mxu0 %v2980_v2  ;;  %2553 = vmatprep.subr.mxu1 %v2980_v2  ;;  %v3833_v3 = vsub.f32 %v3371_v10, %v3801_v7  ;;  %v1406_v29 = vand.u32 4294901760, %v1405_v30  ;;  %v1432_v13 = vand.u32 4294901760, %v3811_v22  ;;  %v1419_v54 = vsub.f32 %v3783_v51, %v1418_v11 }
 0x200   : > { %2527 = vmatpush3.msra.mxu0 %v3700_v40  ;;  %2554 = vmatpush3.msra.mxu1 %v1378_v31  ;;  %v1266_v6 = vsel %vm1261_vm5, %v1265_v19, 0.0  ;;  %v3843_v1 = vand.u32 4294901760, %v3430_v50  ;;  %v3849_v52 = vsub.f32 %v3390_v32, %v3816_v61  ;;  %v1426_v63 = vsub.f32 %v3789_v60, %v1425_v56 }
 0x201   : > { %2528 = vmatprep.subr.mxu0 %v2980_v2  ;;  %2555 = vmatprep.subr.mxu1 %v2980_v2  ;;  %v3845_v10 = vand.u32 4294901760, %v1266_v6  ;;  %v3857_v0 = vand.u32 4294901760, %v3448_v9  ;;  %v1413_v8 = vand.u32 4294901760, %v1412_v44  ;;  %v1439_v14 = vand.u32 4294901760, %v3833_v3 }
 0x202   : > { %2529 = vmatpush3.msra.mxu0 %v3739_v48  ;;  %2556 = vmatpush3.msra.mxu1 %v1385_v59  ;;  %v3866_v49 = vsub.f32 %v3408_v5, %v3829_v43  ;;  %v1433_v31 = vsub.f32 %v3811_v22, %v1432_v13  ;;  %v1420_v37 = vand.u32 4294901760, %v1419_v54  ;;  %v1446_v59 = vand.u32 4294901760, %v3849_v52 }
 0x203   : > { %2530 = vmatprep.subr.mxu0 %v2980_v2  ;;  %2557 = vmatprep.subr.mxu1 %v2980_v2  ;;  %v3862_v32 = vsub.f32 %v1266_v6, %v3845_v10  ;;  %v3878_v5 = vsub.f32 %v3430_v50, %v3843_v1  ;;  %v1427_v17 = vand.u32 4294901760, %v1426_v63  ;;  %v1440_v30 = vsub.f32 %v3833_v3, %v1439_v14 }
 0x204   : > { %2531 = vmatpush3.msra.mxu0 %v3742_v41  ;;  %2558 = vmatpush3.msra.mxu1 %v1392_v38  ;;  %v1453_v23 = vand.u32 4294901760, %v3866_v49  ;;  %v3889_v38 = vsub.f32 %v3448_v9, %v3857_v0  ;;  %v1434_v50 = vand.u32 4294901760, %v1433_v31 }
 0x205   : > { %2532 = vmatprep.subr.mxu0 %v2980_v2  ;;  %2559 = vmatprep.subr.mxu1 %v2980_v2  ;;  %v1351_v55 = vand.u32 4294901760, %v3862_v32  ;;  %v1460_v44 = vand.u32 4294901760, %v3878_v5  ;;  %v1441_v9 = vand.u32 4294901760, %v1440_v30 }
 0x206   : > { %2533 = vmatpush3.msra.mxu0 %v3761_v53  ;;  %2560 = vmatpush3.msra.mxu1 %v1399_v21  ;;  %v1447_v21 = vsub.f32 %v3849_v52, %v1446_v59  ;;  %v1467_v6 = vand.u32 4294901760, %v3889_v38 }
 0x207   : > { %2534 = vmatprep.subr.mxu0 %v2980_v2  ;;  %2561 = vmatprep.subr.mxu1 %v2980_v2  ;;  %v1352_v19 = vsub.f32 %v3862_v32, %v1351_v55 }
 0x208   : > { %2535 = vmatpush3.msra.mxu0 %v3770_v16  ;;  %2562 = vmatpush3.msra.mxu1 %v1406_v29  ;;  %v1454_v29 = vsub.f32 %v3866_v49, %v1453_v23  ;;  %v1448_v63 = vand.u32 4294901760, %v1447_v21 }
 0x209   : > { %2536 = vmatprep.subr.mxu0 %v2980_v2  ;;  %2563 = vmatprep.subr.mxu1 %v2980_v2  ;;  %v1353_v54 = vand.u32 4294901760, %v1352_v19 }
 0x20a   : > { %2537 = vmatpush3.msra.mxu0 %v3801_v7  ;;  %2564 = vmatpush3.msra.mxu1 %v1413_v8  ;;  %v1461_v8 = vsub.f32 %v3878_v5, %v1460_v44  ;;  %v1455_v31 = vand.u32 4294901760, %v1454_v29 }
 0x20b   : > { %2538 = vmatprep.subr.mxu0 %v2980_v2  ;;  %2565 = vmatprep.subr.mxu1 %v2980_v2 }
 0x20c   : > { %2539 = vmatpush3.msra.mxu0 %v3816_v61  ;;  %2566 = vmatpush3.msra.mxu1 %v1420_v37  ;;  %v1468_v37 = vsub.f32 %v3889_v38, %v1467_v6 }
 0x20d   : > { %2540 = vmatprep.subr.mxu0 %v2980_v2  ;;  %2567 = vmatprep.subr.mxu1 %v2980_v2 }
 0x20e   : > { %2541 = vmatpush3.msra.mxu0 %v3829_v43  ;;  %2568 = vmatpush3.msra.mxu1 %v1427_v17  ;;  %v1462_v17 = vand.u32 4294901760, %v1461_v8  ;;  %v1469_v30 = vand.u32 4294901760, %v1468_v37 }
 0x20f   : > { %2542 = vmatprep.subr.mxu0 %v2980_v2  ;;  %2569 = vmatprep.subr.mxu1 %v2980_v2 }
 0x210   : > { %2543 = vmatpush3.msra.mxu0 %v3843_v1  ;;  %2570 = vmatpush3.msra.mxu1 %v1434_v50 }
 0x211   : > { %2544 = vmatprep.subr.mxu0 %v2980_v2  ;;  %2571 = vmatprep.subr.mxu1 %v2980_v2 }
 0x212   : > { %2545 = vmatpush3.msra.mxu0 %v3857_v0  ;;  %2572 = vmatpush3.msra.mxu1 %v1441_v9 }
 0x213   : > { %2573 = vmatprep.subr.mxu1 %v2980_v2  ;;  %2584 = vmatprep.subr.mxu0 %v2980_v2 }
 0x214   : > { %2547 = vmatmul.mubr.f32.vlgmr.msra.gmra.mxu0 %v1353_v54  ;;  %2574 = vmatpush3.msra.mxu1 %v1448_v63 }
 0x215   : > { %2585 = vmatpush3.msra.mxu0 %v3709_v42  ;;  %2575 = vmatprep.subr.mxu1 %v2980_v2 }
 0x216   : > { %2586 = vmatprep.subr.mxu0 %v2980_v2  ;;  %2576 = vmatpush3.msra.mxu1 %v1455_v31 }
 0x217   : > { %2587 = vmatpush3.msra.mxu0 %v3713_v33  ;;  %2577 = vmatprep.subr.mxu1 %v2980_v2 }
 0x218   : > { %2588 = vmatprep.subr.mxu0 %v2980_v2  ;;  %2578 = vmatpush3.msra.mxu1 %v1462_v17 }
 0x219   : > { %2589 = vmatpush3.msra.mxu0 %v3717_v34  ;;  %2579 = vmatprep.subr.mxu1 %v2980_v2 }
 0x21a   : > { %2590 = vmatprep.subr.mxu0 %v2980_v2  ;;  %2580 = vmatpush3.msra.mxu1 %v1469_v30 }
 0x21b   : > { %2591 = vmatpush3.msra.mxu0 %v3721_v35  ;;  %2582 = vmatmul.mubr.f32.vlgmr.msra.gmra.mxu1 %v3845_v10 }
 0x21c   : > { %2592 = vmatprep.subr.mxu0 %v2980_v2  ;;  %2619 = vmatprep.subr.mxu1 %v2980_v2 }
 0x21d   : > { %2593 = vmatpush3.msra.mxu0 %v3726_v36  ;;  %2620 = vmatpush3.msra.mxu1 %v3681_v4 }
 0x21e   : > { %2594 = vmatprep.subr.mxu0 %v2980_v2  ;;  %2621 = vmatprep.subr.mxu1 %v2980_v2 }
 0x21f   : > { %2595 = vmatpush3.msra.mxu0 %v3730_v24  ;;  %2622 = vmatpush3.msra.mxu1 %v3684_v58 }
 0x220   : > { %2596 = vmatprep.subr.mxu0 %v2980_v2  ;;  %2623 = vmatprep.subr.mxu1 %v2980_v2 }
 0x221   : > { %2597 = vmatpush3.msra.mxu0 %v3746_v47  ;;  %2624 = vmatpush3.msra.mxu1 %v3687_v18 }
 0x222   : > { %2598 = vmatprep.subr.mxu0 %v2980_v2  ;;  %2625 = vmatprep.subr.mxu1 %v2980_v2 }
 0x223   : > { %2599 = vmatpush3.msra.mxu0 %v3775_v28  ;;  %2626 = vmatpush3.msra.mxu1 %v3690_v62 }
 0x224   : > { %2600 = vmatprep.subr.mxu0 %v2980_v2  ;;  %2627 = vmatprep.subr.mxu1 %v2980_v2 }
 0x225   : > { %2601 = vmatpush3.msra.mxu0 %v3783_v51  ;;  %2628 = vmatpush3.msra.mxu1 %v3694_v46 }
 0x226   : > { %2602 = vmatprep.subr.mxu0 %v2980_v2  ;;  %2629 = vmatprep.subr.mxu1 %v2980_v2 }
 0x227   : > { %2603 = vmatpush3.msra.mxu0 %v3789_v60  ;;  %2630 = vmatpush3.msra.mxu1 %v3697_v39 }
 0x228   : > { %2604 = vmatprep.subr.mxu0 %v2980_v2  ;;  %2631 = vmatprep.subr.mxu1 %v2980_v2 }
 0x229   : > { %2605 = vmatpush3.msra.mxu0 %v3811_v22  ;;  %2632 = vmatpush3.msra.mxu1 %v3700_v40 }
 0x22a   : > { %2606 = vmatprep.subr.mxu0 %v2980_v2  ;;  %2633 = vmatprep.subr.mxu1 %v2980_v2 }
 0x22b   : > { %2607 = vmatpush3.msra.mxu0 %v3833_v3  ;;  %2634 = vmatpush3.msra.mxu1 %v3739_v48 }
 0x22c   : > { %2608 = vmatprep.subr.mxu0 %v2980_v2  ;;  %2635 = vmatprep.subr.mxu1 %v2980_v2 }
 0x22d   : > { %2609 = vmatpush3.msra.mxu0 %v3849_v52  ;;  %2636 = vmatpush3.msra.mxu1 %v3742_v41 }
 0x22e   : > { %2610 = vmatprep.subr.mxu0 %v2980_v2  ;;  %2637 = vmatprep.subr.mxu1 %v2980_v2 }
 0x22f   : > { %2611 = vmatpush3.msra.mxu0 %v3866_v49  ;;  %2638 = vmatpush3.msra.mxu1 %v3761_v53 }
 0x230   : > { %2612 = vmatprep.subr.mxu0 %v2980_v2  ;;  %2639 = vmatprep.subr.mxu1 %v2980_v2 }
 0x231   : > { %2613 = vmatpush3.msra.mxu0 %v3878_v5  ;;  %2640 = vmatpush3.msra.mxu1 %v3770_v16 }
 0x232   : > { %2614 = vmatprep.subr.mxu0 %v2980_v2  ;;  %2641 = vmatprep.subr.mxu1 %v2980_v2 }
 0x233   : > { %2615 = vmatpush3.msra.mxu0 %v3889_v38  ;;  %2616 = vmatprep.mubr.msk.f32.mxu0 %vm2981_vm1, %v2980_v2 }
 0x234   : > { %2642 = vmatpush3.msra.mxu1 %v3801_v7  ;;  %2617 = vmatmul.mubr.f32.vlgmr.msra.gmra.mxu0 %v3862_v32 }
 0x235   : > { %2643 = vmatprep.subr.mxu1 %v2980_v2  ;;  %2654 = vmatprep.subr.mxu0 %v2980_v2 }
 0x236   : > { %2644 = vmatpush3.msra.mxu1 %v3816_v61  ;;  %2655 = vmatpush3.msra.mxu0 %v1362_v25 }
 0x237   : > { %2645 = vmatprep.subr.mxu1 %v2980_v2  ;;  %2656 = vmatprep.subr.mxu0 %v2980_v2 }
 0x238   : > { %2646 = vmatpush3.msra.mxu1 %v3829_v43  ;;  %2657 = vmatpush3.msra.mxu0 %v1369_v26 }
 0x239   : > { %2647 = vmatprep.subr.mxu1 %v2980_v2  ;;  %2658 = vmatprep.subr.mxu0 %v2980_v2 }
 0x23a   : > { %2648 = vmatpush3.msra.mxu1 %v3843_v1  ;;  %2659 = vmatpush3.msra.mxu0 %v1376_v45 }
 0x23b   : > { %2649 = vmatprep.subr.mxu1 %v2980_v2  ;;  %2660 = vmatprep.subr.mxu0 %v2980_v2 }
 0x23c   : > { %2650 = vmatpush3.msra.mxu1 %v3857_v0  ;;  %2651 = vmatprep.mubr.msk.f32.mxu1 %vm2981_vm1, %v2980_v2 }
 0x23d   : > { %2661 = vmatpush3.msra.mxu0 %v1383_v27  ;;  %2652 = vmatmul.mubr.f32.vlgmr.msra.gmra.mxu1 %v1351_v55 }
 0x23e   : > { %2662 = vmatprep.subr.mxu0 %v2980_v2  ;;  %2689 = vmatprep.subr.mxu1 %v2980_v2 }
 0x23f   : > { %2663 = vmatpush3.msra.mxu0 %v1390_v57  ;;  %2690 = vmatpush3.msra.mxu1 %v3681_v4 }
 0x240   : > { %2664 = vmatprep.subr.mxu0 %v2980_v2  ;;  %2691 = vmatprep.subr.mxu1 %v2980_v2 }
 0x241   : > { %2665 = vmatpush3.msra.mxu0 %v1397_v15  ;;  %2692 = vmatpush3.msra.mxu1 %v3684_v58 }
 0x242   : > { %2666 = vmatprep.subr.mxu0 %v2980_v2  ;;  %2693 = vmatprep.subr.mxu1 %v2980_v2 }
 0x243   : > { %2667 = vmatpush3.msra.mxu0 %v1404_v20  ;;  %2694 = vmatpush3.msra.mxu1 %v3687_v18 }
 0x244   : > { %2668 = vmatprep.subr.mxu0 %v2980_v2  ;;  %2695 = vmatprep.subr.mxu1 %v2980_v2 }
 0x245   : > { %2669 = vmatpush3.msra.mxu0 %v1411_v12  ;;  %2696 = vmatpush3.msra.mxu1 %v3690_v62 }
 0x246   : > { %2670 = vmatprep.subr.mxu0 %v2980_v2  ;;  %2697 = vmatprep.subr.mxu1 %v2980_v2 }
 0x247   : > { %2671 = vmatpush3.msra.mxu0 %v1418_v11  ;;  %2698 = vmatpush3.msra.mxu1 %v3694_v46 }
 0x248   : > { %2672 = vmatprep.subr.mxu0 %v2980_v2  ;;  %2699 = vmatprep.subr.mxu1 %v2980_v2 }
 0x249   : > { %2673 = vmatpush3.msra.mxu0 %v1425_v56  ;;  %2700 = vmatpush3.msra.mxu1 %v3697_v39 }
 0x24a   : > { %2674 = vmatprep.subr.mxu0 %v2980_v2  ;;  %2701 = vmatprep.subr.mxu1 %v2980_v2 }
 0x24b   : > { %2675 = vmatpush3.msra.mxu0 %v1432_v13  ;;  %2702 = vmatpush3.msra.mxu1 %v3700_v40 }
 0x24c   : > { %2676 = vmatprep.subr.mxu0 %v2980_v2  ;;  %2703 = vmatprep.subr.mxu1 %v2980_v2 }
 0x24d   : > { %2677 = vmatpush3.msra.mxu0 %v1439_v14  ;;  %2704 = vmatpush3.msra.mxu1 %v3739_v48 }
 0x24e   : > { %2678 = vmatprep.subr.mxu0 %v2980_v2  ;;  %2705 = vmatprep.subr.mxu1 %v2980_v2 }
 0x24f   : > { %2679 = vmatpush3.msra.mxu0 %v1446_v59  ;;  %2706 = vmatpush3.msra.mxu1 %v3742_v41 }
 0x250   : > { %2680 = vmatprep.subr.mxu0 %v2980_v2  ;;  %2707 = vmatprep.subr.mxu1 %v2980_v2 }
 0x251   : > { %2681 = vmatpush3.msra.mxu0 %v1453_v23  ;;  %2708 = vmatpush3.msra.mxu1 %v3761_v53 }
 0x252   : > { %2682 = vmatprep.subr.mxu0 %v2980_v2  ;;  %2709 = vmatprep.subr.mxu1 %v2980_v2 }
 0x253   : > { %2683 = vmatpush3.msra.mxu0 %v1460_v44  ;;  %2710 = vmatpush3.msra.mxu1 %v3770_v16 }
 0x254   : > { %2684 = vmatprep.subr.mxu0 %v2980_v2  ;;  %2711 = vmatprep.subr.mxu1 %v2980_v2 }
 0x255   : > { %2685 = vmatpush3.msra.mxu0 %v1467_v6  ;;  %2686 = vmatprep.mubr.msk.f32.mxu0 %vm2981_vm1, %v2980_v2 }
 0x256   : > { %2712 = vmatpush3.msra.mxu1 %v3801_v7  ;;  %2687 = vmatmul.mubr.f32.vlgmr.msra.gmra.mxu0 %v3845_v10 }
 0x257   : > { %2713 = vmatprep.subr.mxu1 %v2980_v2  ;;  %2721 = vmatprep.mubr.msk.f32.mxu1 %vm2981_vm1, %v2980_v2 }
 0x258   : > { %2714 = vmatpush3.msra.mxu1 %v3816_v61 }
 0x259   : > { %2715 = vmatprep.subr.mxu1 %v2980_v2 }
 0x25a   : > { %2716 = vmatpush3.msra.mxu1 %v3829_v43 }
 0x25b   : > { %2717 = vmatprep.subr.mxu1 %v2980_v2 }
 0x25c   : > { %2718 = vmatpush3.msra.mxu1 %v3843_v1 }
 0x25d   : > { %2719 = vmatprep.subr.mxu1 %v2980_v2 }
 0x25e   : > { %2720 = vmatpush3.msra.mxu1 %v3857_v0 }
 0x25f   : > { %2722 = vmatmul.mubr.f32.vlgmr.msra.gmra.mxu1 %v3845_v10 }
 0x260   : > { %2844 = shalt.err (!%p2841_p2)
}
 0x261   : > { %s2845_s28 = scalar_lea.hbm %s1945_s13, 16  ;;  %s2849_s29 = scalar_lea.hbm %s4168_s6, 48 }
 0x262   : > { %p2846_p6 = scmp.ne.s32.totalorder %s1945_s13, %s2845_s28  ;;  %p2850_p11 = scmp.lt.s32.totalorder %s1945_s13, %s4168_s6 }
 0x263   : > { %p2851_p12 = scmp.lt.s32.totalorder %s2849_s29, %s2845_s28 }
 0x264   : > { %p2847_p9 = pnand %p2846_p6, %p3126_p13 }
 0x265   : > { %p2852_p1 = por %p2851_p12, %p2850_p11 }
 0x266   : > { %p2848_p10 = pneg %p2847_p9 }
 0x268   : > { %p2853_p7 = pnand %p2852_p1, %p2848_p10 }
 0x26a   : > { %2856 = shalt.err (!%p2853_p7)
}
 0x26b   : > { %2725 = dma.vmem_to_hbm [thread:$0]  (%p3126_p13), %s1948_s15, 16, %s1945_s13, %s1918_s20   ;;  %v1267_v25 = vld [vmem:[%s3171_s23] sm:$0xf]  ;;  %vm1910_vm1 = vcmask 257024  }
 0x26c   : > { %s2095_s10 = sshll.u32 %s2965_s30, 6  ;;  %s1930_s7 = sshll.u32 %s3171_s23, 4  ;;  %s1931_s7 = int_to_ptr.vmem [resolvable:$true] %s1930_s7 }
 0x26d   : > { %s1928_s21 = scalar_lea.hbm %s4167_s5, %s2095_s10  ;;  %s4228_s13 = sand.u32 1, %s2953_s27  }
 0x26e   : > { %s1913_s15 = scalar_lea.sflag [#allocation4], %s4228_s13  ;;  %s2857_s19 = scalar_lea.vmem %s1931_s7, 64 }
 0x26f   : > { %p2858_p7 = scmp.ne.s32.totalorder %s1931_s7, %s2857_s19  ;;  %s2983_s20 = smov [#allocation3]  }
 0x270   : > { %s2861_s30 = sshll.u32 %s2983_s20, 4  ;;  %s2862_s30 = int_to_ptr.vmem [resolvable:$false] %s2861_s30 }
 0x271   : > { %p2859_p13 = pnand %p2858_p7, %p3092_p3  ;;  %s2863_s16 = scalar_lea.vmem %s2862_s30, 128 }
 0x272   : > { %p2864_p0 = scmp.lt.s32.totalorder %s1931_s7, %s2862_s30  ;;  %p2865_p4 = scmp.lt.s32.totalorder %s2863_s16, %s2857_s19 }
 0x273   : > { %p2860_p1 = pneg %p2859_p13 }
 0x274   : > { %p2866_p5 = por %p2865_p4, %p2864_p0 }
 0x276   : > { %p2867_p8 = pnand %p2866_p5, %p2860_p1 }
 0x2d4   : > { %v1355_v2 = vpop.f32.mrf.mxu0 }
 0x2d6   : > { %v2548_v4 = vpop.f32.mrf.mxu0 }
 0x2db   : > { %v1506_v58 = vpop.f32.mrf.mxu1 }
 0x2dc   : > { %v1507_v33 = vadd.f32 %v1506_v58, %v1355_v2 }
 0x2dd   : > { %v2583_v18 = vpop.f32.mrf.mxu1 }
 0x2f4   : > { %v1610_v62 = vpop.f32.mrf.mxu0 }
 0x2f5   : > { %v1611_v35 = vadd.f32 %v1610_v62, %v1507_v33 }
 0x2f6   : > { %v2618_v46 = vpop.f32.mrf.mxu0 }
 0x2fd   : > { %v1699_v39 = vpop.f32.mrf.mxu1 }
 0x2fe   : > { %v1700_v36 = vadd.f32 %v1699_v39, %v1611_v35 }
 0x2ff   : > { %v2653_v40 = vpop.f32.mrf.mxu1 }
 0x316   : > { %v1818_v42 = vpop.f32.mrf.mxu0 }
 0x317   : > { %v1819_v24 = vadd.f32 %v1818_v42, %v1700_v36 }
 0x318   : > { %v2688_v34 = vpop.f32.mrf.mxu0 }
 0x31f   : > { %v1905_v26 = vpop.f32.mrf.mxu1 }
 0x320   : > { %v1906_v45 = vadd.f32 %v1905_v26, %v1819_v24 }
 0x321   : > { %v2723_v27 = vpop.f32.mrf.mxu1 }
 0x322   : > { %v1909_v48 = vadd.f32 %v1906_v45, %v1267_v25 }
 0x324   : > { %1911 = vst.msk [vmem:[%s3171_s23] sm:$0xf] %vm1910_vm1, %v1909_v48 }
 0x325   : > { %2870 = shalt.err (!%p2867_p8)
}
 0x326   : > { %s2871_s11 = scalar_lea.hbm %s1928_s21, 64  ;;  %s2875_s25 = scalar_lea.hbm %s4167_s5, 128 }
 0x327   : > { %p2872_p2 = scmp.ne.s32.totalorder %s1928_s21, %s2871_s11  ;;  %p2876_p10 = scmp.lt.s32.totalorder %s1928_s21, %s4167_s5 }
 0x328   : > { %p2877_p11 = scmp.lt.s32.totalorder %s2875_s25, %s2871_s11 }
 0x329   : > { %p2873_p6 = pnand %p2872_p2, %p3092_p3 }
 0x32a   : > { %p2878_p12 = por %p2877_p11, %p2876_p10 }
 0x32b   : > { %p2874_p9 = pneg %p2873_p6 }
 0x32d   : > { %p2879_p7 = pnand %p2878_p12, %p2874_p9 }
 0x32f   : > { %2882 = shalt.err (!%p2879_p7)
}
 0x330   : > { %2724 = dma.vmem_to_hbm [thread:$0]  (%p3092_p3), %s1931_s7, 64, %s1928_s21, %s1913_s15  }
 0x331 PF: > { %s4229_s9 = sld [smem:[#allocation11_spill]]  ;;  %p2735_p13 = scmp.ge.s32.totalorder %s2977_s8, 2 }
 0x332   : > { %s4230_s29 = sld [smem:[#allocation17_spill]] }
 0x337   : > { %s1959_s12 = sand.u32 1, %s4229_s9  }
 0x338   : > { %p4231_p1 = scmp.ne.s32.totalorder %s4230_s29, 0  ;;  %s1960_s18 = scalar_lea.sflag [#allocation4], %s1959_s12 }
 0x33a   : > { %p2729_p0 = pnand %p2735_p13, %p4231_p1 }
 0x33c   : > { %p2730_p4 = pneg %p2729_p0 }
 0x33e   : > { %2928 = dma.done.wait (%p2730_p4), %s1960_s18, 64  }
 0x33f   : > { %2930 = vsyncadd (%p2730_p4), %s1960_s18, 4294967232  ;;  %s4232_s10 = sld [smem:[#allocation9_spill]] }
 0x340   : > { %s4233_s17 = sld [smem:[#allocation19_spill]] }
 0x345   : > { %s1968_s22 = sand.u32 1, %s4232_s10  }
 0x346   : > { %p4234_p5 = scmp.ne.s32.totalorder %s4233_s17, 0  ;;  %s1969_s14 = scalar_lea.sflag [#allocation6], %s1968_s22 }
 0x348   : > { %p2732_p8 = pnand %p2735_p13, %p4234_p5 }
 0x34a   : > { %p2733_p2 = pneg %p2732_p8 }
 0x34c   : > { %2932 = dma.done.wait (%p2733_p2), %s1969_s14, 16  }
 0x34d   : > { %2934 = vsyncadd (%p2733_p2), %s1969_s14, 4294967280  ;;  %s24_s8 = sadd.s32 1, %s2977_s8   ;;  %s4235_s7 = sld [smem:[#allocation10_spill]] }
 0x34e   : > { %p21_p3 = scmp.ge.s32.totalorder %s24_s8, 6   ;;  %s4236_s25 = sld [smem:[#allocation20_spill]] }
 0x34f   : > { %s4237_s21 = sld [smem:[#allocation12_spill]]  ;;  %s4243_s23 = smov %s2941_s24 }
 0x350   : > { %s4238_s28 = sld [smem:[#allocation18_spill]]  ;;  %s4245_s26 = smov %s2953_s27 }
 0x351   : > { %s4239_s29 = sld [smem:[#allocation13_spill]] }
 0x352   : > { %s4240_s30 = sld [smem:[#allocation14_spill]] }
 0x353   : > { %s4241_s2 = sld [smem:[#allocation15_spill]]  ;;  %s4244_s24 = smov %s4235_s7 }
 0x354   : > { %s4242_s13 = sld [smem:[#allocation16_spill]] }
 0x355   : > { %s4246_s27 = smov %s4237_s21 }
 0x356   :  { %23 = sbr.rel (!%p21_p3) target bundleno = 11 (0xb), region = 106 }
 0x35a   : > { %s4247_s7 = smov %s4242_s13 }
 0x35b   :  { %1973 = vsyncpa [#allocation4], 1 }
 0x35c   :  { %1975 = vsyncpa [#allocation4 + $0x1], 1 }
 0x35d   :  { %1976 = vsyncpa [#allocation6], 1 }
 0x35e   :  { %1978 = vsyncpa [#allocation6 + $0x1], 1 }

</bundles_post_ra>
